<compile_context>
chip_gen: v5e
topology: v5e:2x2
jax: 0.10.0
libtpu: 0.0.40
codegen_flags: <defaults>
</compile_context>

<pallas_src>
import math
from functools import partial

import numpy as np
import jax
import jax.numpy as jnp
from jax import lax
from jax.experimental import pallas as pl
from jax.experimental.pallas import tpu as pltpu

BN_EPS = 1e-5
BN_SCALE = 1.0 / math.sqrt(1.0 + BN_EPS)   # eval-mode BN with default running stats

NUM_SAMPLING_POINTS = 128
LEVELS = 3
N_DEPTHS = [32, 16, 8]
INTERVAL_RATIOS = [4, 2, 1]


def _round_up(x, m):
    return ((x + m - 1) // m) * m


# ----------------------------------------------------------------------------
# Pallas kernel 1: single-pass matmul (bf16 x bf16 -> f32 acc) + bias + act,
#                  bf16 store.
# ----------------------------------------------------------------------------
def _make_mm_kernel(act):
    def kernel(a_ref, b_ref, bias_ref, o_ref):
        r = jnp.dot(a_ref[...], b_ref[...], preferred_element_type=jnp.float32)
        r = r + bias_ref[...]
        if act == "relu":
            r = jnp.maximum(r, 0.0)
        elif act == "leaky":
            r = jnp.where(r >= 0.0, r, 0.2 * r)
        o_ref[...] = r.astype(o_ref.dtype)
    return kernel


_MM_KERNELS = {a: _make_mm_kernel(a) for a in ("none", "relu", "leaky")}


def _pick_tm(M, K):
    """Largest M tile dividing M with tm*K*2B <= 2 MiB, preferring >=2 tiles."""
    divs = [c for c in (2048, 1024, 512, 256, 128, 64, 32, 16, 8) if M % c == 0]
    if not divs:
        return None
    budget = 2 << 20
    for c in divs:
        if c * K * 2 <= budget and (M // c >= 2 or c == divs[-1]):
            return c
    return divs[-1]


def _matmul_bias_act(a, b, bias, act):
    """a: (M, K) bf16; b: (K, Np) bf16, Np % 128 == 0; bias: (1, Np) f32.
    Returns (M, Np) bf16."""
    M, K = a.shape
    K2, Np = b.shape
    assert K == K2

    Mp = M
    tm = _pick_tm(M, K)
    if tm is None:                                   # rare: ragged M, small pad
        Mp = _round_up(M, 16)
        a = jnp.pad(a, ((0, Mp - M), (0, 0)))
        tm = _pick_tm(Mp, K)
    tn = 256 if Np % 256 == 0 else 128

    out = pl.pallas_call(
        _MM_KERNELS[act],
        out_shape=jax.ShapeDtypeStruct((Mp, Np), jnp.bfloat16),
        grid=(Mp // tm, Np // tn),
        in_specs=[
            pl.BlockSpec((tm, K), lambda i, j: (i, 0)),
            pl.BlockSpec((K, tn), lambda i, j: (0, j)),
            pl.BlockSpec((1, tn), lambda i, j: (0, j)),
        ],
        out_specs=pl.BlockSpec((tm, tn), lambda i, j: (i, j)),
        compiler_params=pltpu.CompilerParams(
            dimension_semantics=("parallel", "parallel")),
    )(a, b, bias)
    return out[:M] if Mp != M else out


# ----------------------------------------------------------------------------
# Convolutions (im2col fallback): XLA patches (channels-last) + Pallas matmul
# ----------------------------------------------------------------------------
@partial(jax.jit,
         static_argnames=("filter_shape", "strides", "padding", "dn", "act", "oc"))
def _conv_via_patches(x, w_mat, bias, *, filter_shape, strides, padding, dn, act, oc):
    patches = lax.conv_general_dilated_patches(
        x, filter_shape=filter_shape, window_strides=strides,
        padding=padding, dimension_numbers=dn)
    sp = patches.shape[:-1]
    ck = patches.shape[-1]
    a = patches.reshape(-1, ck).astype(jnp.bfloat16)
    out = _matmul_bias_act(a, w_mat, bias, act)
    return out[:, :oc].reshape(sp + (oc,))


def conv2d_cl(x, p, stride=1, padding=1, act="none"):
    return _conv_via_patches(
        x, p["w"], p["b"],
        filter_shape=(3, 3), strides=(stride, stride),
        padding=((padding, padding), (padding, padding)),
        dn=("NHWC", "HWIO", "NHWC"), act=act, oc=p["oc"])


# ----------------------------------------------------------------------------
# Pallas kernel 2: fused stride-1 3x3x3 conv (tap extraction fused in-kernel).
# Input is expanded only 3x along W in XLA; depth taps come from 3 shifted
# BlockSpecs and height taps from aligned in-kernel row slices.
# ----------------------------------------------------------------------------
def _make_fused_conv3d_kernel(H, W, C3, act):
    HW = H * W

    def kernel(y0_ref, y1_ref, y2_ref, w_ref, b_ref, o_ref):
        yrefs = (y0_ref, y1_ref, y2_ref)
        acc = None
        for kd in range(3):
            for kh in range(3):
                a = yrefs[kd][0, 0, kh * W: kh * W + HW, :].astype(jnp.float32)
                t = kd * 3 + kh
                wc = w_ref[t * C3:(t + 1) * C3, :]
                r = jnp.dot(a, wc, preferred_element_type=jnp.float32)
                acc = r if acc is None else acc + r
        acc = acc + b_ref[...]
        if act == "relu":
            acc = jnp.maximum(acc, 0.0)
        elif act == "leaky":
            acc = jnp.where(acc >= 0.0, acc, 0.2 * acc)
        oc = o_ref.shape[-1]
        o_ref[0, 0] = acc[:, :oc].astype(o_ref.dtype)

    return kernel


def _fused3d_ok(shape, oc):
    N, S, H, W, C = shape
    if W < 8 or W % 8 != 0 or C % 8 != 0:
        return False
    C3 = 3 * C
    hpw = (H + 2) * W
    lane_in = _round_up(C3, 128)
    lane_out = 128
    est = (2 * (3 * hpw * lane_in * 2 + H * W * lane_out * 2)   # dbl-buffered blocks
           + 2 * 9 * C3 * 128 * 4                                # resident weights
           + hpw * lane_in * 4 + 2 * H * W * lane_in * 4)        # in-kernel f32 temps
    return est <= 12 * (1 << 20)


@partial(jax.jit, static_argnames=("act", "oc"))
def _conv3d_fused_call(x, wf, bias, *, act, oc):
    N, S, H, W, C = x.shape
    C3 = 3 * C
    HpW = (H + 2) * W
    HW = H * W
    xp = jnp.pad(x.astype(jnp.bfloat16),
                 ((0, 0), (1, 1), (1, 1), (1, 1), (0, 0)))
    # 3x W-window expansion (only 3x HBM, vs 27x for full im2col)
    y = jnp.concatenate([xp[:, :, :, 0:W, :],
                         xp[:, :, :, 1:W + 1, :],
                         xp[:, :, :, 2:W + 2, :]], axis=-1)
    y = y.reshape(N, S + 2, HpW, C3)
    kernel = _make_fused_conv3d_kernel(H, W, C3, act)
    out = pl.pallas_call(
        kernel,
        out_shape=jax.ShapeDtypeStruct((N, S, HW, oc), jnp.bfloat16),
        grid=(N, S),
        in_specs=[pl.BlockSpec((1, 1, HpW, C3),
                               (lambda n, d, kd=kd: (n, d + kd, 0, 0)))
                  for kd in range(3)]
                 + [pl.BlockSpec((9 * C3, 128), lambda n, d: (0, 0)),
                    pl.BlockSpec((1, 128), lambda n, d: (0, 0))],
        out_specs=pl.BlockSpec((1, 1, HW, oc), lambda n, d: (n, d, 0, 0)),
        compiler_params=pltpu.CompilerParams(
            dimension_semantics=("parallel", "parallel")),
    )(y, y, y, wf, bias)
    return out.reshape(N, S, H, W, oc)


def conv3d_cl(x, p, stride=1, padding=1, act="none"):
    if (stride == 1 and padding == 1 and "wf" in p
            and _fused3d_ok(x.shape, p["oc"])):
        return _conv3d_fused_call(x, p["wf"], p["b"], act=act, oc=p["oc"])
    return _conv_via_patches(
        x, p["w"], p["b"],
        filter_shape=(3, 3, 3), strides=(stride,) * 3,
        padding=((padding, padding),) * 3,
        dn=("NDHWC", "DHWIO", "NDHWC"), act=act, oc=p["oc"])


# ----------------------------------------------------------------------------
# ConvTranspose3d(k=3,s=2,p=1,op=1) as 2x2x2-patch matmul + pixel shuffle.
# ----------------------------------------------------------------------------
@partial(jax.jit, static_argnames=("act", "oc"))
def _deconv3d_subpixel(x, w_mat, bias, *, act, oc):
    patches = lax.conv_general_dilated_patches(
        x, filter_shape=(2, 2, 2), window_strides=(1, 1, 1),
        padding=((0, 1), (0, 1), (0, 1)),
        dimension_numbers=("NDHWC", "DHWIO", "NDHWC"))
    N, D, H, W, ck = patches.shape
    a = patches.reshape(-1, ck).astype(jnp.bfloat16)
    out = _matmul_bias_act(a, w_mat, bias, act)            # (N*D*H*W, Np) bf16
    out = out[:, :8 * oc].reshape(N, D, H, W, 2, 2, 2, oc)
    # XLA fuses this permute with the downstream skip-add (all bf16).
    out = out.transpose(0, 1, 4, 2, 5, 3, 6, 7).reshape(N, 2 * D, 2 * H, 2 * W, oc)
    return out


def deconv3d_cl(x, p, act="relu"):
    return _deconv3d_subpixel(x, p["w"], p["b"], act=act, oc=p["oc"])


def _resize_bilinear_nhwc(x, H, W):
    return jax.image.resize(x, (x.shape[0], H, W, x.shape[3]), method="bilinear")


def _resize_bilinear_nchw(x, H, W):
    return jax.image.resize(x, (x.shape[0], x.shape[1], H, W), method="bilinear")


# ----------------------------------------------------------------------------
# Pallas kernel 3: variance cost-volume fusion (bf16 in/out, f32 math)
# ----------------------------------------------------------------------------
def _make_variance_kernel(n_src):
    inv_nv = 1.0 / float(n_src + 1)

    def kernel(*refs):
        key_ref = refs[0]                    # (1, 1, L)
        corr_refs = refs[1:1 + n_src]        # each (1, S, L)
        o_ref = refs[1 + n_src]              # (1, S, L)
        k = key_ref[...].astype(jnp.float32)
        mean = k * 1.0
        for c in corr_refs:
            mean = mean + c[...].astype(jnp.float32)
        mean = mean * inv_nv                 # (1, S, L)
        d = k - mean
        acc = d * d
        for c in corr_refs:
            d = c[...].astype(jnp.float32) - mean
            acc = acc + d * d
        o_ref[...] = (acc * inv_nv).astype(o_ref.dtype)

    return kernel


def _pick_lane_tile(P, S):
    for cand in (8192, 4096, 2048, 1024, 512, 256, 128):
        if P % cand == 0 and cand * S * 4 <= (1 << 19):
            return cand
    return P


@jax.jit
def _variance_call(key_flat, *corr_flats):
    n_src = len(corr_flats)
    N, S, P = corr_flats[0].shape
    L = _pick_lane_tile(P, S)
    kernel = _make_variance_kernel(n_src)
    return pl.pallas_call(
        kernel,
        out_shape=jax.ShapeDtypeStruct((N, S, P), jnp.bfloat16),
        grid=(N, P // L),
        in_specs=[pl.BlockSpec((1, 1, L), lambda n, j: (n, 0, j))]
                 + [pl.BlockSpec((1, S, L), lambda n, j: (n, 0, j))] * n_src,
        out_specs=pl.BlockSpec((1, S, L), lambda n, j: (n, 0, j)),
        compiler_params=pltpu.CompilerParams(
            dimension_semantics=("parallel", "parallel")),
    )(key_flat, *corr_flats)


def variance_costvolume_fusion(feat_key, corrs, masks):
    """feat_key: (N,H,W,C) bf16; corrs: list of (N,S,H,W,C) bf16."""
    N, H, W, C = feat_key.shape
    S = corrs[0].shape[1]
    key_flat = feat_key.reshape(N, 1, H * W * C)
    corr_flats = [c.reshape(N, S, H * W * C) for c in corrs]
    out = _variance_call(key_flat, *corr_flats)
    return out.reshape(N, S, H, W, C), None


# ----------------------------------------------------------------------------
# Pallas kernel 4: softmax over depth + inverse-depth regression + uncertainty
# ----------------------------------------------------------------------------
def _depth_regression_kernel(score_ref, invd_ref, out_ref):
    s = score_ref[0].astype(jnp.float32)          # (S, L)
    sid = invd_ref[0].astype(jnp.float32)         # (S, L) or (S, 1)
    S = s.shape[0]
    m = jnp.max(s, axis=0, keepdims=True)
    e = jnp.exp(s - m)
    p = e / jnp.sum(e, axis=0, keepdims=True)     # softmax over depth samples
    invd = jnp.sum(p * sid, axis=0, keepdims=True)
    depth = 1.0 / invd
    # photometric confidence: sum of 4 probs around the expected depth index
    idxs = lax.broadcasted_iota(jnp.float32, (S, 1), 0)
    e_idx = jnp.sum(p * idxs, axis=0, keepdims=True)
    fi = jnp.floor(e_idx)
    mask = (idxs >= fi - 1.0) & (idxs <= fi + 2.0)
    conf = jnp.sum(jnp.where(mask, p, 0.0), axis=0, keepdims=True)
    out_ref[0, 0:1] = depth
    out_ref[0, 1:2] = invd
    out_ref[0, 2:3] = 1.0 - conf


@jax.jit
def pallas_softmax_depth_regression(score, sampling_invdepths):
    """score: (N,S,H,W); sampling_invdepths broadcastable to (N,S,H,W)."""
    N, S, H, W = score.shape
    HW = H * W
    sc = score.reshape(N, S, HW)
    si = sampling_invdepths
    spatially_const = (si.shape[2] == 1 and si.shape[3] == 1)
    if spatially_const:
        sd = si.reshape(si.shape[0], S, 1).astype(jnp.float32)
    else:
        sd = jnp.broadcast_to(si, (N, S, H, W)).reshape(N, S, HW).astype(jnp.float32)

    L = HW
    for cand in (4096, 2048, 1024, 512, 256, 128):
        if HW % cand == 0:
            L = cand
            break

    if spatially_const:
        if si.shape[0] == 1:
            sd_spec = pl.BlockSpec((1, S, 1), lambda n, j: (0, 0, 0))
        else:
            sd_spec = pl.BlockSpec((1, S, 1), lambda n, j: (n, 0, 0))
    else:
        sd_spec = pl.BlockSpec((1, S, L), lambda n, j: (n, 0, j))

    out = pl.pallas_call(
        _depth_regression_kernel,
        out_shape=jax.ShapeDtypeStruct((N, 3, HW), jnp.float32),
        grid=(N, HW // L),
        in_specs=[pl.BlockSpec((1, S, L), lambda n, j: (n, 0, j)), sd_spec],
        out_specs=pl.BlockSpec((1, 3, L), lambda n, j: (n, 0, j)),
        compiler_params=pltpu.CompilerParams(
            dimension_semantics=("parallel", "parallel")),
    )(sc, sd)

    depth = out[:, 0].reshape(N, 1, H, W)
    invdepth = out[:, 1].reshape(N, 1, H, W)
    unc = out[:, 2].reshape(N, 1, H, W)
    return depth, invdepth, unc


# ----------------------------------------------------------------------------
# UNet 2-D feature encoder (channels-last, bf16 activations)
# ----------------------------------------------------------------------------
def unet_forward(p, x):
    c0 = conv2d_cl(x, p["conv0a"], act="leaky")
    c0 = conv2d_cl(c0, p["conv0b"], act="leaky")
    c1 = conv2d_cl(c0, p["conv1a"], stride=2, act="leaky")
    c1 = conv2d_cl(c1, p["conv1b"], act="leaky")
    c2 = conv2d_cl(c1, p["conv2a"], stride=2, act="leaky")
    c2 = conv2d_cl(c2, p["conv2b"], act="leaky")
    level0 = conv2d_cl(c2, p["out0"])
    u1 = _resize_bilinear_nhwc(c2, c1.shape[1], c1.shape[2])
    u1 = conv2d_cl(jnp.concatenate([u1, c1], axis=-1), p["up1"], act="leaky")
    level1 = conv2d_cl(u1, p["out1"])
    u2 = _resize_bilinear_nhwc(u1, c0.shape[1], c0.shape[2])
    u2 = conv2d_cl(jnp.concatenate([u2, c0], axis=-1), p["up2"], act="leaky")
    level2 = conv2d_cl(u2, p["out2"])
    return {"level_0": level0, "level_1": level1, "level_2": level2}


# ----------------------------------------------------------------------------
# Plane-sweep correlation (corr_type='warponly'); warp gather stays in XLA
# ----------------------------------------------------------------------------
def _bilinear_sample_cl(feat, u, v):
    """feat: (N,H,W,C) bf16; u, v: (N,S,P) f32.  Returns (N,S,P,C) f32.
    Uses 2 gathers (u-corner pairs) instead of 4 corner gathers."""
    N, H, W, C = feat.shape
    S, P = u.shape[1], u.shape[2]
    feat_r = jnp.concatenate(
        [feat[:, :, 1:, :], jnp.zeros((N, H, 1, C), feat.dtype)], axis=2)
    featx = jnp.concatenate([feat, feat_r], axis=-1).reshape(N, H * W, 2 * C)

    u0 = jnp.floor(u)
    v0 = jnp.floor(v)
    du = (u - u0)[..., None]
    dv = (v - v0)[..., None]
    iu = jnp.clip(u0, 0, W - 1).astype(jnp.int32)
    iv0 = jnp.clip(v0, 0, H - 1).astype(jnp.int32)
    iv1 = jnp.clip(v0 + 1, 0, H - 1).astype(jnp.int32)

    def gather_pair(iv):
        flat = (iv * W + iu).reshape(N, -1)
        g = jax.vmap(lambda f, idx: f[idx])(featx, flat)   # (N, S*P, 2C)
        return g.reshape(N, S, P, 2 * C)

    g0 = gather_pair(iv0)
    g1 = gather_pair(iv1)
    top = (1 - du) * g0[..., :C].astype(jnp.float32) + du * g0[..., C:].astype(jnp.float32)
    bot = (1 - du) * g1[..., :C].astype(jnp.float32) + du * g1[..., C:].astype(jnp.float32)
    return (1 - dv) * top + dv * bot


@jax.jit
def _warp_source(feat_src, K_key, K_src, T_key_to_src, sampling_invdepths):
    N, H, W, C = feat_src.shape
    S = sampling_invdepths.shape[1]
    ys, xs = jnp.meshgrid(jnp.arange(H, dtype=jnp.float32),
                          jnp.arange(W, dtype=jnp.float32), indexing="ij")
    pix = jnp.stack([xs.ravel(), ys.ravel(), jnp.ones(H * W, jnp.float32)], 0)
    rays = jnp.einsum("nij,jp->nip", jnp.linalg.inv(K_key), pix)          # (N,3,P)
    invd = sampling_invdepths.reshape(
        sampling_invdepths.shape[0], S, -1).astype(jnp.float32)           # (n,S,P|1)
    pts = rays[:, None] / jnp.maximum(invd[:, :, None, :], 1e-12)         # (N,S,3,P)
    R = T_key_to_src[:, :3, :3]
    t = T_key_to_src[:, :3, 3]
    pts_src = jnp.einsum("nij,nsjp->nsip", R, pts) + t[:, None, :, None]
    proj = jnp.einsum("nij,nsjp->nsip", K_src, pts_src)
    z = proj[:, :, 2]
    zsafe = jnp.where(jnp.abs(z) < 1e-6, 1e-6, z)
    u = proj[:, :, 0] / zsafe
    v = proj[:, :, 1] / zsafe
    valid = (z > 1e-6) & (u >= 0) & (u <= W - 1) & (v >= 0) & (v <= H - 1)
    warped = _bilinear_sample_cl(feat_src, u, v)                          # (N,S,P,C)
    warped = (warped * valid[..., None]).astype(jnp.bfloat16)
    return (warped.reshape(N, S, H, W, C),
            valid.reshape(N, S, H, W, 1).astype(jnp.bfloat16))


def planesweep_correlation(feat_key, K_key, feat_sources, src_to_key_transforms,
                           K_sources, sampling_invdepths):
    corrs, masks = [], []
    for feat_src, T_s2k, K_src in zip(feat_sources, src_to_key_transforms, K_sources):
        T_k2s = jnp.linalg.inv(T_s2k)
        w, m = _warp_source(feat_src, K_key, K_src, T_k2s, sampling_invdepths)
        corrs.append(w)
        masks.append(m)
    return corrs, masks, sampling_invdepths


# ----------------------------------------------------------------------------
# MVSNet 3-D cost regularisation encoder / decoder (channels-last volumes)
# ----------------------------------------------------------------------------
def costvolume_encoder(p, fused_corr):
    c0 = conv3d_cl(fused_corr, p["conv0"], act="relu")
    c1 = conv3d_cl(c0, p["conv1"], stride=2, act="relu")
    c2 = conv3d_cl(c1, p["conv2"], act="relu")
    c3 = conv3d_cl(c2, p["conv3"], stride=2, act="relu")
    c4 = conv3d_cl(c3, p["conv4"], act="relu")
    c5 = conv3d_cl(c4, p["conv5"], stride=2, act="relu")
    c6 = conv3d_cl(c5, p["conv6"], act="relu")
    return {"conv0": c0, "conv2": c2, "conv4": c4}, c6


def costvolume_decoder(p, enc_fused, sampling_invdepths, all_enc):
    x = deconv3d_cl(enc_fused, p["deconv7"]) + all_enc["conv4"]
    x = deconv3d_cl(x, p["deconv9"]) + all_enc["conv2"]
    x = deconv3d_cl(x, p["deconv11"]) + all_enc["conv0"]
    score = conv3d_cl(x, p["prob"])[..., 0]                 # (N, S, H, W)
    depth, invdepth, unc = pallas_softmax_depth_regression(score, sampling_invdepths)
    return {"depth": depth, "invdepth": invdepth, "uncertainty": unc}


# ----------------------------------------------------------------------------
# Parameter init: kaiming-normal, zero bias, matmul-ready (BN folded)
# ----------------------------------------------------------------------------
def _kaiming(key, shape, fan_in, a=0.2):
    std = math.sqrt(2.0 / (1.0 + a * a)) / math.sqrt(fan_in)
    return std * jax.random.normal(key, shape, dtype=jnp.float32)


def _conv_param(key, out_c, in_c, ksize, bn):
    ksize = tuple(ksize)
    ck = in_c * int(np.prod(ksize))
    w = _kaiming(key, (out_c, in_c) + ksize, ck)             # OI<spatial>
    scale = BN_SCALE if bn else 1.0
    wmat = (w.reshape(out_c, ck) * scale).T                  # (CK, O) patch layout
    npad = _round_up(out_c, 128)
    p = {"w": jnp.pad(wmat, ((0, 0), (0, npad - out_c))).astype(jnp.bfloat16),
         "b": jnp.zeros((1, npad), jnp.float32),
         "oc": out_c}
    if len(ksize) == 3:
        # tap-major, channel-minor layout for the fused stride-1 conv3d kernel
        wf = (jnp.transpose(w, (2, 3, 4, 1, 0)) * scale).reshape(ck, out_c)
        p["wf"] = jnp.pad(wf, ((0, 0), (0, npad - out_c))).astype(jnp.float32)
    return p


_TAP = {(0, 0): 1, (1, 0): 2, (1, 1): 0}   # (output parity, input offset) -> k tap


def _deconv_param(key, in_c, out_c, bn=True):
    k = 3
    w = np.asarray(_kaiming(key, (in_c, out_c, k, k, k), out_c * k ** 3),
                   dtype=np.float32)
    weq = np.zeros((8 * out_c, in_c, 2, 2, 2), np.float32)
    for a in (0, 1):
        for b_ in (0, 1):
            for c in (0, 1):
                sub = (a * 2 + b_) * 2 + c
                for dd in (0, 1):
                    if (a, dd) not in _TAP:
                        continue
                    kd = _TAP[(a, dd)]
                    for dh in (0, 1):
                        if (b_, dh) not in _TAP:
                            continue
                        kh = _TAP[(b_, dh)]
                        for dw in (0, 1):
                            if (c, dw) not in _TAP:
                                continue
                            kw = _TAP[(c, dw)]
                            weq[sub * out_c:(sub + 1) * out_c, :, dd, dh, dw] = \
                                w[:, :, kd, kh, kw].T
    o_new = 8 * out_c
    ck = in_c * 8
    scale = BN_SCALE if bn else 1.0
    wmat = (weq.reshape(o_new, ck) * scale).T                # (CK, O_new)
    npad = _round_up(o_new, 128)
    wmat = jnp.pad(jnp.asarray(wmat), ((0, 0), (0, npad - o_new))).astype(jnp.bfloat16)
    bias = jnp.zeros((1, npad), jnp.float32)
    return {"w": wmat, "b": bias, "oc": out_c}


def init_params(rng):
    keys = iter(jax.random.split(rng, 64))
    enc = {
        "conv0a": _conv_param(next(keys), 8, 3, (3, 3), bn=True),
        "conv0b": _conv_param(next(keys), 8, 8, (3, 3), bn=True),
        "conv1a": _conv_param(next(keys), 16, 8, (3, 3), bn=True),
        "conv1b": _conv_param(next(keys), 16, 16, (3, 3), bn=True),
        "conv2a": _conv_param(next(keys), 32, 16, (3, 3), bn=True),
        "conv2b": _conv_param(next(keys), 32, 32, (3, 3), bn=True),
        "out0": _conv_param(next(keys), 32, 32, (3, 3), bn=False),
        "up1": _conv_param(next(keys), 16, 48, (3, 3), bn=True),
        "out1": _conv_param(next(keys), 16, 16, (3, 3), bn=False),
        "up2": _conv_param(next(keys), 8, 24, (3, 3), bn=True),
        "out2": _conv_param(next(keys), 8, 8, (3, 3), bn=False),
    }
    params = {"encoder": enc}
    for level in range(LEVELS):
        in_ch = 8 * INTERVAL_RATIOS[level]
        enc3d = {
            "conv0": _conv_param(next(keys), 8, in_ch, (3, 3, 3), bn=True),
            "conv1": _conv_param(next(keys), 16, 8, (3, 3, 3), bn=True),
            "conv2": _conv_param(next(keys), 16, 16, (3, 3, 3), bn=True),
            "conv3": _conv_param(next(keys), 32, 16, (3, 3, 3), bn=True),
            "conv4": _conv_param(next(keys), 32, 32, (3, 3, 3), bn=True),
            "conv5": _conv_param(next(keys), 64, 32, (3, 3, 3), bn=True),
            "conv6": _conv_param(next(keys), 64, 64, (3, 3, 3), bn=True),
        }
        dec3d = {
            "deconv7": _deconv_param(next(keys), 64, 32, bn=True),
            "deconv9": _deconv_param(next(keys), 32, 16, bn=True),
            "deconv11": _deconv_param(next(keys), 16, 8, bn=True),
            "prob": _conv_param(next(keys), 1, 8, (3, 3, 3), bn=False),
        }
        params[f"cost_reg_{level}"] = {"enc": enc3d, "dec": dec3d}
    return params


# ----------------------------------------------------------------------------
# MVSNet_Cascade forward
# ----------------------------------------------------------------------------
def _scale_intrinsics(K, level):
    s = 2.0 ** level
    K = K.at[:, 0, 0].multiply(s)
    K = K.at[:, 1, 1].multiply(s)
    K = K.at[:, 0, 2].multiply(s)
    K = K.at[:, 1, 2].multiply(s)
    return K


def mvsnet_cascade_forward(params, images, poses, intrinsics, keyview_idx,
                           depth_range=None):
    # keyview_idx is assumed constant across the batch (python int), mirroring
    # select_by_index / exclude_index on the view list.
    ki = int(keyview_idx)
    V = len(images)
    intrinsics_key = intrinsics[ki]
    intrinsics_sources = [x for i, x in enumerate(intrinsics) if i != ki]
    source_to_key_transforms = [p for i, p in enumerate(poses) if i != ki]

    N = images[0].shape[0]
    H_img, W_img = images[0].shape[2], images[0].shape[3]
    if depth_range is None:
        min_depth = jnp.full((N,), 0.2, jnp.float32)
        max_depth = jnp.full((N,), 100.0, jnp.float32)
    else:
        min_depth, max_depth = depth_range
    depth_interval = (max_depth - min_depth) / NUM_SAMPLING_POINTS     # (N,)

    # Run the UNet once over all stacked views (amortizes grid-step overhead).
    imgs_all = jnp.stack(images, axis=0).reshape(V * N, 3, H_img, W_img)
    enc_all = unet_forward(params["encoder"], jnp.transpose(imgs_all, (0, 2, 3, 1)))
    enc_views = {k: v.reshape((V, N) + v.shape[1:]) for k, v in enc_all.items()}
    all_enc_key = {k: v[ki] for k, v in enc_views.items()}
    all_enc_sources = [{k: v[i] for k, v in enc_views.items()}
                       for i in range(V) if i != ki]

    results = {}
    for level in range(LEVELS):
        D = N_DEPTHS[level]
        feat_key = all_enc_key[f"level_{level}"]                        # (N,H,W,C)
        feat_sources = [e[f"level_{level}"] for e in all_enc_sources]
        H, W = feat_key.shape[1], feat_key.shape[2]
        cur_int = (depth_interval * INTERVAL_RATIOS[level]).reshape(1, 1, 1, 1)
        delta = D / 2 * cur_int

        if level > 0:
            prev = results[f"depth_{level - 1}"]
            up = _resize_bilinear_nchw(prev, prev.shape[2] * 2, prev.shape[3] * 2)
            depth_start = jnp.maximum(up - delta, 1e-7)
        else:
            depth_start = min_depth.reshape(1, 1, 1, 1)

        steps = jnp.arange(D, dtype=jnp.float32).reshape(1, D, 1, 1)
        # Kept at its natural (possibly spatially-constant) shape; broadcast only
        # where required.
        sampling_invdepths = jnp.flip(1.0 / (depth_start + steps * cur_int), axis=1)

        Kk = _scale_intrinsics(intrinsics_key, level)
        Ks = [_scale_intrinsics(x, level) for x in intrinsics_sources]

        corrs, masks, sampling_invdepths = planesweep_correlation(
            feat_key, Kk, feat_sources, source_to_key_transforms, Ks,
            sampling_invdepths)

        fused_corr, _ = variance_costvolume_fusion(feat_key, corrs, masks)

        cr = params[f"cost_reg_{level}"]
        all_enc_fused, enc_fused = costvolume_encoder(cr["enc"], fused_corr)
        dec = costvolume_decoder(cr["dec"], enc_fused, sampling_invdepths,
                                 all_enc_fused)

        results[f"depth_{level}"] = dec["depth"]
        results[f"depth_uncertainty_{level}"] = dec["uncertainty"]
        results[f"aux_{level}"] = dec

    aux = {
        "depths_all": [results[f"depth_{l}"] for l in range(LEVELS)],
        "depth_uncertainties_all": [results[f"depth_uncertainty_{l}"]
                                    for l in range(LEVELS)],
        "invdepths_all": [results[f"aux_{l}"]["invdepth"] for l in range(LEVELS)],
    }
    pred = {
        "depth": results["depth_2"],
        "depth_uncertainty": results["depth_uncertainty_2"],
        "invdepth": results["aux_2"]["invdepth"],
    }
    return pred, aux


# ----------------------------------------------------------------------------
if __name__ == "__main__":
    rng = jax.random.PRNGKey(0)
    pkey, ikey = jax.random.split(rng)
    params = init_params(pkey)

    # Small shapes: batch=1, 2 views (1 key + 1 source), 3x32x32 images
    # (H, W multiples of 32, as produced by the input adapter).
    Nb, V, H, W = 1, 2, 32, 32
    img_keys = jax.random.split(ikey, V)
    images = [jax.random.normal(img_keys[i], (Nb, 3, H, W), jnp.float32)
              for i in range(V)]
    # intrinsics are given in pixel units of the level-0 (1/4-res) feature maps;
    # the model scales them by 2**level for the finer levels.
    K0 = jnp.array([[[8.0, 0.0, 4.0],
                     [0.0, 8.0, 4.0],
                     [0.0, 0.0, 1.0]]], jnp.float32)
    intrinsics = [K0, K0]
    T_key = jnp.eye(4, dtype=jnp.float32)[None]
    T_src = jnp.eye(4, dtype=jnp.float32).at[0, 3].set(0.1)[None]
    poses = [T_key, T_src]          # source-to-key transforms per view
    keyview_idx = 0

    pred, aux = mvsnet_cascade_forward(params, images, poses, intrinsics,
                                       keyview_idx, depth_range=None)
    jax.block_until_ready(pred["depth"])
    jax.block_until_ready(pred["depth_uncertainty"])
    jax.block_until_ready(pred["invdepth"])
    assert pred["depth"].shape == (Nb, 1, H, W)
    assert aux["depths_all"][0].shape == (Nb, 1, H // 4, W // 4)
    assert aux["depths_all"][1].shape == (Nb, 1, H // 2, W // 2)
    assert aux["depths_all"][2].shape == (Nb, 1, H, W)
    print("KERNEL_OK")
</pallas_src>

<mosaic_0001>
module attributes {stable_mosaic.version = 11 : i64} {
  func.func @kernel(%arg0: i32, %arg1: i32, %arg2: memref<1024x27xbf16, #tpu.memory_space<vmem>>, %arg3: memref<27x128xbf16, #tpu.memory_space<vmem>>, %arg4: memref<1x128xf32, #tpu.memory_space<vmem>>, %arg5: memref<1024x128xbf16, #tpu.memory_space<vmem>>) attributes {dimension_semantics = [#tpu.dimension_semantics<parallel>, #tpu.dimension_semantics<parallel>], iteration_bounds = array<i64: 2, 1>, scalar_prefetch = 0 : i64, scratch_operands = 0 : i64, tpu.core_type = #tpu.core_type<tc>, window_params = [{transform_indices = @transform_0, window_bounds = array<i64: 1024, 27>}, {transform_indices = @transform_1, window_bounds = array<i64: 27, 128>}, {transform_indices = @transform_2, window_bounds = array<i64: 1, 128>}, {transform_indices = @transform_3, window_bounds = array<i64: 1024, 128>}]} {
    %c0 = arith.constant 0 : index
    %c0_0 = arith.constant 0 : index
    %0 = vector.load %arg2[%c0, %c0_0] : memref<1024x27xbf16, #tpu.memory_space<vmem>>, vector<1024x27xbf16>
    %c0_1 = arith.constant 0 : index
    %c0_2 = arith.constant 0 : index
    %1 = vector.load %arg3[%c0_1, %c0_2] : memref<27x128xbf16, #tpu.memory_space<vmem>>, vector<27x128xbf16>
    %cst = arith.constant dense<0.000000e+00> : vector<1024x128xf32>
    %2 = tpu.matmul %0, %1, %cst {dimension_numbers = #tpu.dot_dimension_numbers<[1], [0], [0], [1], [0, 0, 1, 1], [], []>} : vector<1024x27xbf16>, vector<27x128xbf16>, vector<1024x128xf32> -> vector<1024x128xf32>
    %c0_3 = arith.constant 0 : index
    %c0_4 = arith.constant 0 : index
    %3 = vector.load %arg4[%c0_3, %c0_4] : memref<1x128xf32, #tpu.memory_space<vmem>>, vector<1x128xf32>
    %4 = vector.broadcast %3 : vector<1x128xf32> to vector<1024x128xf32>
    %5 = arith.addf %2, %4 : vector<1024x128xf32>
    %cst_5 = arith.constant 0.000000e+00 : f32
    %6 = vector.broadcast %cst_5 : f32 to vector<1024x128xf32>
    %7 = arith.cmpf oge, %5, %6 : vector<1024x128xf32>
    %cst_6 = arith.constant 2.000000e-01 : f32
    %8 = vector.broadcast %cst_6 : f32 to vector<1024x128xf32>
    %9 = arith.mulf %8, %5 : vector<1024x128xf32>
    %10 = arith.select %7, %5, %9 : vector<1024x128xi1>, vector<1024x128xf32>
    %11 = arith.truncf %10 : vector<1024x128xf32> to vector<1024x128xbf16>
    %c0_7 = arith.constant 0 : index
    %c0_8 = arith.constant 0 : index
    %12 = vector.load %arg5[%c0_7, %c0_8] : memref<1024x128xbf16, #tpu.memory_space<vmem>>, vector<1024x128xbf16>
    tpu.vector_store %arg5[%c0_7, %c0_8], %11 {strides = array<i32>} : memref<1024x128xbf16, #tpu.memory_space<vmem>>, vector<1024x128xbf16>,
    return
  }
  func.func @transform_0(%arg0: i32, %arg1: i32) -> (i32, i32) {
    %c0_i32 = arith.constant 0 : i32
    %c0_i32_0 = arith.constant 0 : i32
    return %arg0, %c0_i32 : i32, i32
  }
  func.func @transform_1(%arg0: i32, %arg1: i32) -> (i32, i32) {
    %c0_i32 = arith.constant 0 : i32
    %c0_i32_0 = arith.constant 0 : i32
    return %c0_i32, %arg1 : i32, i32
  }
  func.func @transform_2(%arg0: i32, %arg1: i32) -> (i32, i32) {
    %c0_i32 = arith.constant 0 : i32
    %c0_i32_0 = arith.constant 0 : i32
    return %c0_i32, %arg1 : i32, i32
  }
  func.func @transform_3(%arg0: i32, %arg1: i32) -> (i32, i32) {
    %c0_i32 = arith.constant 0 : i32
    return %arg0, %arg1 : i32, i32
  }
}

</mosaic_0001>

<bundles_post_ra>
// kernel: _conv_via_patches.1
= control target key start
LH: loop header
LB: loop body
LE: loop exit
PB: predicated region body
PF: predicated region fallthrough
CT: control target
= control target key end

     0   :  { %s2832_s12 = smov 0   ;;  %s2834_s13 = smov 0   ;;  %s3215_s0 = inlined_call_operand.vmem [shape: bf16[2048,27], index: 0, kind: input, shape index: {}]   ;;  %s3216_s1 = inlined_call_operand.vmem [shape: bf16[27,128], index: 1, kind: input, shape index: {}]   ;;  %s3217_s2 = inlined_call_operand.vmem [shape: f32[1,128], index: 2, kind: input, shape index: {}]   ;;  %s3218_s3 = inlined_call_operand.vmem [shape: bf16[2048,128], index: 3, kind: output, shape index: {}]  }
   0x1   :  { %s2836_s14 = smov 0  }
   0x2 LB: > { %s25_s15 = sadd.s32 1, %s2805_s13  ;;  %p1970_p0 = scmp.ge.s32.totalorder %s2809_s14, 1  ;;  %s2809_s14 = sphi %s2836_s14, %s13_s14   ;;  %s2805_s13 = sphi %s2834_s13, %s3220_s13   ;;  %s2801_s12 = sphi %s2832_s12, %s3219_s12  }
   0x3   : > { %p27_p1 = scmp.ge.s32.totalorder %s25_s15, 2  ;;  %p169_p2 = scmp.lt.s32.totalorder %s2809_s14, 3 }
   0x5   : > { %s3222_s15 = smov (%p27_p1, %s25_s15), 0  ;;  %p170_p3 = pnand %p1970_p0, %p169_p2 }
   0x6   : > { %s1971_s20 = sshll.u32 (!%p170_p3), %s2801_s12, 7 }
   0x7   : > { %173 = sbr.rel (%p170_p3) target bundleno = 415 (0x19f), region = 32  ;;  %p204_p4 = scmp.lt.s32.totalorder (!%p170_p3), %s1971_s20, 255 }
   0xc   : > { %v2237_v0 = vld [vmem:[%s3216_s1 + $0x8] sm:$0xf]  ;;  %v2370_v1 = vld [vmem:[%s3216_s1 + $0x8] sm:$0x30]  ;;  %vm886_vm0 = vcmask 1044480   ;;  %vm887_vm1 = vcmask 1045504  }
   0xd   : > { %v2238_v2 = vor.u32 %v2370_v1, %v2237_v0  ;;  %v2811_v3 = vmov 65535   ;;  %s3224_s20 = smov (!%p204_p4, %s1971_s20), 255  ;;  %v2369_v7 = vld [vmem:[%s3216_s1] sm:$0xff]  ;;  %vm693_vm2 = vcmask 220160  }
   0xe   : > { %v888_v4 = vsel %vm886_vm0, 4294967295, %v2811_v3  ;;  %s1972_s23 = sshll.u32 %s3224_s20, 2  ;;  %v2940_v46 = vld [vmem:[%s3217_s2] ss:$0 sm:$0xff] }
   0xf   : > { %v889_v5 = vsel %vm887_vm1, %v888_v4, 0  ;;  %s2867_s26 = scalar_lea.vmem %s3215_s0, %s1972_s23  ;;  %s2957_s4 = scalar_lea.vmem %s3218_s3, %s1972_s23 }
  0x10   : > { %v891_v6 = vand.u32 %v2238_v2, %v889_v5  ;;  %v2305_v8 = vld [vmem:[%s2867_s26] sm:$0xff]  ;;  %v2306_v12 = vld [vmem:[%s2867_s26 + $0x8] sm:$0xff]  ;;  %v2307_v16 = vld [vmem:[%s2867_s26 + $0x10] sm:$0xff] }
  0x11   : > { %v2321_v9 = vld [vmem:[%s2867_s26 + $0x80] sm:$0xff]  ;;  %v2322_v13 = vld [vmem:[%s2867_s26 + $0x88] sm:$0xff]  ;;  %v2323_v17 = vld [vmem:[%s2867_s26 + $0x90] sm:$0xff] }
  0x12   : > { %899 = vmatpush.bf16.msra.mxu0 %v891_v6  ;;  %2754 = vmatpush.bf16.msra.mxu1 %v891_v6  ;;  %v2337_v10 = vld [vmem:[%s2867_s26 + $0x100] sm:$0xff]  ;;  %v2338_v14 = vld [vmem:[%s2867_s26 + $0x108] sm:$0xff]  ;;  %v2339_v18 = vld [vmem:[%s2867_s26 + $0x110] sm:$0xff] }
  0x13   : > { %2755 = vmatpush.bf16.msra.mxu2 %v891_v6  ;;  %2756 = vmatpush.bf16.msra.mxu3 %v891_v6  ;;  %v2353_v11 = vld [vmem:[%s2867_s26 + $0x180] sm:$0xff]  ;;  %v2354_v15 = vld [vmem:[%s2867_s26 + $0x188] sm:$0xff]  ;;  %v2355_v19 = vld [vmem:[%s2867_s26 + $0x190] sm:$0xff] }
  0x14   : > { %v2308_v20 = vld [vmem:[%s2867_s26 + $0x18] sm:$0xff]  ;;  %v2309_v24 = vld [vmem:[%s2867_s26 + $0x20] sm:$0xff]  ;;  %v2310_v28 = vld [vmem:[%s2867_s26 + $0x28] sm:$0xff] }
  0x15   : > { %v2324_v21 = vld [vmem:[%s2867_s26 + $0x98] sm:$0xff]  ;;  %v2325_v25 = vld [vmem:[%s2867_s26 + $0xa0] sm:$0xff]  ;;  %v2326_v29 = vld [vmem:[%s2867_s26 + $0xa8] sm:$0xff] }
  0x16   : > { %900 = vmatpush.bf16.msra.mxu0 %v2369_v7  ;;  %2757 = vmatpush.bf16.msra.mxu1 %v2369_v7  ;;  %v2340_v22 = vld [vmem:[%s2867_s26 + $0x118] sm:$0xff]  ;;  %v2341_v26 = vld [vmem:[%s2867_s26 + $0x120] sm:$0xff]  ;;  %v2342_v30 = vld [vmem:[%s2867_s26 + $0x128] sm:$0xff] }
  0x17   : > { %2758 = vmatpush.bf16.msra.mxu2 %v2369_v7  ;;  %2759 = vmatpush.bf16.msra.mxu3 %v2369_v7  ;;  %v2356_v23 = vld [vmem:[%s2867_s26 + $0x198] sm:$0xff]  ;;  %v2357_v27 = vld [vmem:[%s2867_s26 + $0x1a0] sm:$0xff]  ;;  %v2358_v31 = vld [vmem:[%s2867_s26 + $0x1a8] sm:$0xff] }
  0x18   : > { %v2311_v32 = vld [vmem:[%s2867_s26 + $0x30] sm:$0xff]  ;;  %v2312_v36 = vld [vmem:[%s2867_s26 + $0x38] sm:$0xff]  ;;  %v2313_v40 = vld [vmem:[%s2867_s26 + $0x40] sm:$0xff] }
  0x19   : > { %2239 = vmatmul.msk.bf16.vlgmr.msra.gmra.mxu0 %vm693_vm2, %v2305_v8  ;;  %2255 = vmatmul.msk.bf16.vlgmr.msra.gmra.mxu1 %vm693_vm2, %v2321_v9  ;;  %v2327_v33 = vld [vmem:[%s2867_s26 + $0xb0] sm:$0xff]  ;;  %v2328_v37 = vld [vmem:[%s2867_s26 + $0xb8] sm:$0xff]  ;;  %v2329_v41 = vld [vmem:[%s2867_s26 + $0xc0] sm:$0xff] }
  0x1a   : > { %2271 = vmatmul.msk.bf16.vlgmr.msra.gmra.mxu2 %vm693_vm2, %v2337_v10  ;;  %2287 = vmatmul.msk.bf16.vlgmr.msra.gmra.mxu3 %vm693_vm2, %v2353_v11  ;;  %v2343_v34 = vld [vmem:[%s2867_s26 + $0x130] sm:$0xff]  ;;  %v2344_v38 = vld [vmem:[%s2867_s26 + $0x138] sm:$0xff]  ;;  %v2345_v44 = vld [vmem:[%s2867_s26 + $0x140] sm:$0xff] }
  0x1b   : > { %v2359_v35 = vld [vmem:[%s2867_s26 + $0x1b0] sm:$0xff]  ;;  %v2360_v39 = vld [vmem:[%s2867_s26 + $0x1b8] sm:$0xff]  ;;  %v2361_v45 = vld [vmem:[%s2867_s26 + $0x1c0] sm:$0xff] }
  0x1c   : > { %v2314_v6 = vld [vmem:[%s2867_s26 + $0x48] sm:$0xff] }
  0x1d   : > { %v2330_v7 = vld [vmem:[%s2867_s26 + $0xc8] sm:$0xff] }
  0x29   : > { %2240 = vmatmul.msk.bf16.gmra.mxu0 %vm693_vm2, %v2306_v12  ;;  %2256 = vmatmul.msk.bf16.gmra.mxu1 %vm693_vm2, %v2322_v13  ;;  %v2346_v13 = vld [vmem:[%s2867_s26 + $0x148] sm:$0xff] }
  0x2a   : > { %2272 = vmatmul.msk.bf16.gmra.mxu2 %vm693_vm2, %v2338_v14  ;;  %2288 = vmatmul.msk.bf16.gmra.mxu3 %vm693_vm2, %v2354_v15  ;;  %v2362_v14 = vld [vmem:[%s2867_s26 + $0x1c8] sm:$0xff] }
  0x39   : > { %2241 = vmatmul.msk.bf16.gmra.mxu0 %vm693_vm2, %v2307_v16  ;;  %2257 = vmatmul.msk.bf16.gmra.mxu1 %vm693_vm2, %v2323_v17 }
  0x3a   : > { %2273 = vmatmul.msk.bf16.gmra.mxu2 %vm693_vm2, %v2339_v18  ;;  %2289 = vmatmul.msk.bf16.gmra.mxu3 %vm693_vm2, %v2355_v19 }
  0x49   : > { %2242 = vmatmul.msk.bf16.gmra.mxu0 %vm693_vm2, %v2308_v20  ;;  %2258 = vmatmul.msk.bf16.gmra.mxu1 %vm693_vm2, %v2324_v21 }
  0x4a   : > { %2274 = vmatmul.msk.bf16.gmra.mxu2 %vm693_vm2, %v2340_v22  ;;  %2290 = vmatmul.msk.bf16.gmra.mxu3 %vm693_vm2, %v2356_v23 }
  0x59   : > { %2243 = vmatmul.msk.bf16.gmra.mxu0 %vm693_vm2, %v2309_v24  ;;  %2259 = vmatmul.msk.bf16.gmra.mxu1 %vm693_vm2, %v2325_v25 }
  0x5a   : > { %2275 = vmatmul.msk.bf16.gmra.mxu2 %vm693_vm2, %v2341_v26  ;;  %2291 = vmatmul.msk.bf16.gmra.mxu3 %vm693_vm2, %v2357_v27 }
  0x69   : > { %2244 = vmatmul.msk.bf16.gmra.mxu0 %vm693_vm2, %v2310_v28  ;;  %2260 = vmatmul.msk.bf16.gmra.mxu1 %vm693_vm2, %v2326_v29 }
  0x6a   : > { %2276 = vmatmul.msk.bf16.gmra.mxu2 %vm693_vm2, %v2342_v30  ;;  %2292 = vmatmul.msk.bf16.gmra.mxu3 %vm693_vm2, %v2358_v31 }
  0x79   : > { %2245 = vmatmul.msk.bf16.gmra.mxu0 %vm693_vm2, %v2311_v32  ;;  %2261 = vmatmul.msk.bf16.gmra.mxu1 %vm693_vm2, %v2327_v33 }
  0x7a   : > { %2277 = vmatmul.msk.bf16.gmra.mxu2 %vm693_vm2, %v2343_v34  ;;  %2293 = vmatmul.msk.bf16.gmra.mxu3 %vm693_vm2, %v2359_v35 }
  0x89   : > { %2246 = vmatmul.msk.bf16.gmra.mxu0 %vm693_vm2, %v2312_v36  ;;  %2262 = vmatmul.msk.bf16.gmra.mxu1 %vm693_vm2, %v2328_v37 }
  0x8a   : > { %2278 = vmatmul.msk.bf16.gmra.mxu2 %vm693_vm2, %v2344_v38  ;;  %2294 = vmatmul.msk.bf16.gmra.mxu3 %vm693_vm2, %v2360_v39 }
  0x96   : > { %v902_v42 = vpop.f32.mrf.mxu0  ;;  %v982_v43 = vpop.f32.mrf.mxu1 }
  0x97   : > { %v903_v47 = vadd.f32 %v2940_v46, %v902_v42  ;;  %v983_v48 = vadd.f32 %v2940_v46, %v982_v43 }
  0x99   : > { %2247 = vmatmul.msk.bf16.gmra.mxu0 %vm693_vm2, %v2313_v40  ;;  %2263 = vmatmul.msk.bf16.gmra.mxu1 %vm693_vm2, %v2329_v41  ;;  %v1350_v53 = vmul.f32 0.2, %v903_v47  ;;  %v1382_v54 = vmul.f32 0.2, %v983_v48  ;;  %vm1222_vm3 = vcmp.ge.f32.partialorder %v903_v47, 0.0  ;;  %vm1254_vm4 = vcmp.ge.f32.partialorder %v983_v48, 0.0 }
  0x9a   : > { %2279 = vmatmul.msk.bf16.gmra.mxu2 %vm693_vm2, %v2345_v44  ;;  %2295 = vmatmul.msk.bf16.gmra.mxu3 %vm693_vm2, %v2361_v45 }
  0x9b   : > { %v1478_v61 = vsel %vm1222_vm3, %v903_v47, %v1350_v53  ;;  %v1510_v62 = vsel %vm1254_vm4, %v983_v48, %v1382_v54  ;;  %v2315_v47 = vld [vmem:[%s2867_s26 + $0x50] sm:$0xff] }
  0x9c   : > { %v2331_v48 = vld [vmem:[%s2867_s26 + $0xd0] sm:$0xff] }
  0x9d   : > { %v1062_v49 = vpop.f32.mrf.mxu2  ;;  %v1142_v50 = vpop.f32.mrf.mxu3  ;;  %v2347_v54 = vld [vmem:[%s2867_s26 + $0x150] sm:$0xff] }
  0x9e   : > { %v904_v51 = vpop.f32.mrf.mxu0  ;;  %v984_v52 = vpop.f32.mrf.mxu1  ;;  %v1063_v57 = vadd.f32 %v2940_v46, %v1062_v49  ;;  %v1143_v60 = vadd.f32 %v2940_v46, %v1142_v50 }
  0x9f   : > { %v905_v55 = vadd.f32 %v2940_v46, %v904_v51  ;;  %v985_v56 = vadd.f32 %v2940_v46, %v984_v52 }
  0xa0   : > { %v1414_v3 = vmul.f32 0.2, %v1063_v57  ;;  %vm1286_vm7 = vcmp.ge.f32.partialorder %v1063_v57, 0.0  ;;  %v1446_v8 = vmul.f32 0.2, %v1143_v60  ;;  %vm1318_vm8 = vcmp.ge.f32.partialorder %v1143_v60, 0.0 }
  0xa1   : > { %vm1223_vm5 = vcmp.ge.f32.partialorder %v905_v55, 0.0  ;;  %v1351_v58 = vmul.f32 0.2, %v905_v55  ;;  %vm1255_vm6 = vcmp.ge.f32.partialorder %v985_v56, 0.0  ;;  %v1383_v59 = vmul.f32 0.2, %v985_v56 }
  0xa2   : > { %v1542_v17 = vsel %vm1286_vm7, %v1063_v57, %v1414_v3  ;;  %v1574_v18 = vsel %vm1318_vm8, %v1143_v60, %v1446_v8 }
  0xa3   : > { %v1479_v63 = vsel %vm1223_vm5, %v905_v55, %v1351_v58  ;;  %v1511_v0 = vsel %vm1255_vm6, %v985_v56, %v1383_v59  ;;  %v2363_v55 = vld [vmem:[%s2867_s26 + $0x1d0] sm:$0xff] }
  0xa4   : > { %v2374_v1 = vpack.c.bf16 %v1479_v63, %v1478_v61  ;;  %v2454_v2 = vpack.c.bf16 %v1511_v0, %v1510_v62 }
  0xa5   : > { %v1064_v4 = vpop.f32.mrf.mxu2  ;;  %v1144_v5 = vpop.f32.mrf.mxu3 }
  0xa6   : > { %2375 = vst [vmem:[%s2957_s4] sm:$0xff] %v2374_v1   ;;  %v1065_v9 = vadd.f32 %v2940_v46, %v1064_v4  ;;  %v1145_v10 = vadd.f32 %v2940_v46, %v1144_v5  ;;  %v907_v11 = vpop.f32.mrf.mxu0  ;;  %v987_v12 = vpop.f32.mrf.mxu1 }
  0xa7   : > { %2706 = vst [vmem:[%s2957_s4 + $0x80] sm:$0xff] %v2454_v2   ;;  %v908_v23 = vadd.f32 %v2940_v46, %v907_v11  ;;  %v988_v24 = vadd.f32 %v2940_v46, %v987_v12 }
  0xa8   : > { %vm1287_vm9 = vcmp.ge.f32.partialorder %v1065_v9, 0.0  ;;  %v1415_v15 = vmul.f32 0.2, %v1065_v9  ;;  %vm1319_vm10 = vcmp.ge.f32.partialorder %v1145_v10, 0.0  ;;  %v1447_v16 = vmul.f32 0.2, %v1145_v10 }
  0xa9   : > { %2248 = vmatmul.msk.bf16.gmra.mxu0 %vm693_vm2, %v2314_v6  ;;  %2264 = vmatmul.msk.bf16.gmra.mxu1 %vm693_vm2, %v2330_v7  ;;  %v1352_v29 = vmul.f32 0.2, %v908_v23  ;;  %v1384_v30 = vmul.f32 0.2, %v988_v24  ;;  %vm1224_vm11 = vcmp.ge.f32.partialorder %v908_v23, 0.0  ;;  %vm1256_vm12 = vcmp.ge.f32.partialorder %v988_v24, 0.0 }
  0xaa   : > { %v1543_v19 = vsel %vm1287_vm9, %v1065_v9, %v1415_v15  ;;  %v1575_v20 = vsel %vm1319_vm10, %v1145_v10, %v1447_v16  ;;  %2280 = vmatmul.msk.bf16.gmra.mxu2 %vm693_vm2, %v2346_v13  ;;  %2296 = vmatmul.msk.bf16.gmra.mxu3 %vm693_vm2, %v2362_v14 }
  0xab   : > { %v2534_v21 = vpack.c.bf16 %v1543_v19, %v1542_v17  ;;  %v2614_v22 = vpack.c.bf16 %v1575_v20, %v1574_v18  ;;  %v1480_v37 = vsel %vm1224_vm11, %v908_v23, %v1352_v29  ;;  %v1512_v38 = vsel %vm1256_vm12, %v988_v24, %v1384_v30  ;;  %v2316_v23 = vld [vmem:[%s2867_s26 + $0x58] sm:$0xff] }
  0xac   : > { %v2332_v24 = vld [vmem:[%s2867_s26 + $0xd8] sm:$0xff] }
  0xad   : > { %2722 = vst [vmem:[%s2957_s4 + $0x100] sm:$0xff] %v2534_v21   ;;  %v1067_v25 = vpop.f32.mrf.mxu2  ;;  %v1147_v26 = vpop.f32.mrf.mxu3  ;;  %v2348_v30 = vld [vmem:[%s2867_s26 + $0x158] sm:$0xff] }
  0xae   : > { %2738 = vst [vmem:[%s2957_s4 + $0x180] sm:$0xff] %v2614_v22   ;;  %v909_v27 = vpop.f32.mrf.mxu0  ;;  %v989_v28 = vpop.f32.mrf.mxu1  ;;  %v1068_v33 = vadd.f32 %v2940_v46, %v1067_v25  ;;  %v1148_v36 = vadd.f32 %v2940_v46, %v1147_v26 }
  0xaf   : > { %v910_v31 = vadd.f32 %v2940_v46, %v909_v27  ;;  %v990_v32 = vadd.f32 %v2940_v46, %v989_v28 }
  0xb0   : > { %v1416_v43 = vmul.f32 0.2, %v1068_v33  ;;  %vm1288_vm15 = vcmp.ge.f32.partialorder %v1068_v33, 0.0  ;;  %v1448_v49 = vmul.f32 0.2, %v1148_v36  ;;  %vm1320_vm0 = vcmp.ge.f32.partialorder %v1148_v36, 0.0 }
  0xb1   : > { %vm1225_vm13 = vcmp.ge.f32.partialorder %v910_v31, 0.0  ;;  %v1353_v34 = vmul.f32 0.2, %v910_v31  ;;  %vm1257_vm14 = vcmp.ge.f32.partialorder %v990_v32, 0.0  ;;  %v1385_v35 = vmul.f32 0.2, %v990_v32 }
  0xb2   : > { %v1544_v58 = vsel %vm1288_vm15, %v1068_v33, %v1416_v43  ;;  %v1576_v59 = vsel %vm1320_vm0, %v1148_v36, %v1448_v49 }
  0xb3   : > { %v1481_v39 = vsel %vm1225_vm13, %v910_v31, %v1353_v34  ;;  %v1513_v40 = vsel %vm1257_vm14, %v990_v32, %v1385_v35  ;;  %v2364_v31 = vld [vmem:[%s2867_s26 + $0x1d8] sm:$0xff] }
  0xb4   : > { %v2379_v41 = vpack.c.bf16 %v1481_v39, %v1480_v37  ;;  %v2459_v42 = vpack.c.bf16 %v1513_v40, %v1512_v38 }
  0xb5   : > { %v1069_v44 = vpop.f32.mrf.mxu2  ;;  %v1149_v45 = vpop.f32.mrf.mxu3 }
  0xb6   : > { %2691 = vst [vmem:[%s2957_s4 + $0x8] sm:$0xff] %v2379_v41   ;;  %v1070_v50 = vadd.f32 %v2940_v46, %v1069_v44  ;;  %v1150_v51 = vadd.f32 %v2940_v46, %v1149_v45  ;;  %v912_v52 = vpop.f32.mrf.mxu0  ;;  %v992_v53 = vpop.f32.mrf.mxu1 }
  0xb7   : > { %2707 = vst [vmem:[%s2957_s4 + $0x88] sm:$0xff] %v2459_v42   ;;  %v913_v0 = vadd.f32 %v2940_v46, %v912_v52  ;;  %v993_v1 = vadd.f32 %v2940_v46, %v992_v53 }
  0xb8   : > { %vm1289_vm1 = vcmp.ge.f32.partialorder %v1070_v50, 0.0  ;;  %v1417_v56 = vmul.f32 0.2, %v1070_v50  ;;  %vm1321_vm3 = vcmp.ge.f32.partialorder %v1150_v51, 0.0  ;;  %v1449_v57 = vmul.f32 0.2, %v1150_v51 }
  0xb9   : > { %2249 = vmatmul.msk.bf16.gmra.mxu0 %vm693_vm2, %v2315_v47  ;;  %2265 = vmatmul.msk.bf16.gmra.mxu1 %vm693_vm2, %v2331_v48  ;;  %v1354_v6 = vmul.f32 0.2, %v913_v0  ;;  %v1386_v7 = vmul.f32 0.2, %v993_v1  ;;  %vm1226_vm4 = vcmp.ge.f32.partialorder %v913_v0, 0.0  ;;  %vm1258_vm5 = vcmp.ge.f32.partialorder %v993_v1, 0.0 }
  0xba   : > { %v1545_v60 = vsel %vm1289_vm1, %v1070_v50, %v1417_v56  ;;  %v1577_v61 = vsel %vm1321_vm3, %v1150_v51, %v1449_v57  ;;  %2281 = vmatmul.msk.bf16.gmra.mxu2 %vm693_vm2, %v2347_v54  ;;  %2297 = vmatmul.msk.bf16.gmra.mxu3 %vm693_vm2, %v2363_v55 }
  0xbb   : > { %v2539_v62 = vpack.c.bf16 %v1545_v60, %v1544_v58  ;;  %v2619_v63 = vpack.c.bf16 %v1577_v61, %v1576_v59  ;;  %v1482_v14 = vsel %vm1226_vm4, %v913_v0, %v1354_v6  ;;  %v1514_v15 = vsel %vm1258_vm5, %v993_v1, %v1386_v7  ;;  %v2317_v0 = vld [vmem:[%s2867_s26 + $0x60] sm:$0xff] }
  0xbc   : > { %v2333_v1 = vld [vmem:[%s2867_s26 + $0xe0] sm:$0xff] }
  0xbd   : > { %2723 = vst [vmem:[%s2957_s4 + $0x108] sm:$0xff] %v2539_v62   ;;  %v1072_v2 = vpop.f32.mrf.mxu2  ;;  %v1152_v3 = vpop.f32.mrf.mxu3  ;;  %v2349_v7 = vld [vmem:[%s2867_s26 + $0x160] sm:$0xff] }
  0xbe   : > { %2739 = vst [vmem:[%s2957_s4 + $0x188] sm:$0xff] %v2619_v63   ;;  %v914_v4 = vpop.f32.mrf.mxu0  ;;  %v994_v5 = vpop.f32.mrf.mxu1  ;;  %v1073_v10 = vadd.f32 %v2940_v46, %v1072_v2  ;;  %v1153_v13 = vadd.f32 %v2940_v46, %v1152_v3 }
  0xbf   : > { %v915_v8 = vadd.f32 %v2940_v46, %v914_v4  ;;  %v995_v9 = vadd.f32 %v2940_v46, %v994_v5 }
  0xc0   : > { %v1418_v20 = vmul.f32 0.2, %v1073_v10  ;;  %vm1290_vm8 = vcmp.ge.f32.partialorder %v1073_v10, 0.0  ;;  %v1450_v25 = vmul.f32 0.2, %v1153_v13  ;;  %vm1322_vm9 = vcmp.ge.f32.partialorder %v1153_v13, 0.0 }
  0xc1   : > { %vm1227_vm6 = vcmp.ge.f32.partialorder %v915_v8, 0.0  ;;  %v1355_v11 = vmul.f32 0.2, %v915_v8  ;;  %vm1259_vm7 = vcmp.ge.f32.partialorder %v995_v9, 0.0  ;;  %v1387_v12 = vmul.f32 0.2, %v995_v9 }
  0xc2   : > { %v1546_v34 = vsel %vm1290_vm8, %v1073_v10, %v1418_v20  ;;  %v1578_v35 = vsel %vm1322_vm9, %v1153_v13, %v1450_v25 }
  0xc3   : > { %v1483_v16 = vsel %vm1227_vm6, %v915_v8, %v1355_v11  ;;  %v1515_v17 = vsel %vm1259_vm7, %v995_v9, %v1387_v12  ;;  %v2365_v8 = vld [vmem:[%s2867_s26 + $0x1e0] sm:$0xff] }
  0xc4   : > { %v2384_v18 = vpack.c.bf16 %v1483_v16, %v1482_v14  ;;  %v2464_v19 = vpack.c.bf16 %v1515_v17, %v1514_v15 }
  0xc5   : > { %v1074_v21 = vpop.f32.mrf.mxu2  ;;  %v1154_v22 = vpop.f32.mrf.mxu3 }
  0xc6   : > { %2692 = vst [vmem:[%s2957_s4 + $0x10] sm:$0xff] %v2384_v18   ;;  %v1075_v26 = vadd.f32 %v2940_v46, %v1074_v21  ;;  %v1155_v27 = vadd.f32 %v2940_v46, %v1154_v22  ;;  %v917_v28 = vpop.f32.mrf.mxu0  ;;  %v997_v29 = vpop.f32.mrf.mxu1 }
  0xc7   : > { %2708 = vst [vmem:[%s2957_s4 + $0x90] sm:$0xff] %v2464_v19   ;;  %v918_v40 = vadd.f32 %v2940_v46, %v917_v28  ;;  %v998_v41 = vadd.f32 %v2940_v46, %v997_v29 }
  0xc8   : > { %vm1291_vm10 = vcmp.ge.f32.partialorder %v1075_v26, 0.0  ;;  %v1419_v32 = vmul.f32 0.2, %v1075_v26  ;;  %vm1323_vm11 = vcmp.ge.f32.partialorder %v1155_v27, 0.0  ;;  %v1451_v33 = vmul.f32 0.2, %v1155_v27 }
  0xc9   : > { %2250 = vmatmul.msk.bf16.gmra.mxu0 %vm693_vm2, %v2316_v23  ;;  %2266 = vmatmul.msk.bf16.gmra.mxu1 %vm693_vm2, %v2332_v24  ;;  %v1356_v47 = vmul.f32 0.2, %v918_v40  ;;  %v1388_v48 = vmul.f32 0.2, %v998_v41  ;;  %vm1228_vm12 = vcmp.ge.f32.partialorder %v918_v40, 0.0  ;;  %vm1260_vm13 = vcmp.ge.f32.partialorder %v998_v41, 0.0 }
  0xca   : > { %v1547_v36 = vsel %vm1291_vm10, %v1075_v26, %v1419_v32  ;;  %v1579_v37 = vsel %vm1323_vm11, %v1155_v27, %v1451_v33  ;;  %2282 = vmatmul.msk.bf16.gmra.mxu2 %vm693_vm2, %v2348_v30  ;;  %2298 = vmatmul.msk.bf16.gmra.mxu3 %vm693_vm2, %v2364_v31 }
  0xcb   : > { %v2544_v38 = vpack.c.bf16 %v1547_v36, %v1546_v34  ;;  %v2624_v39 = vpack.c.bf16 %v1579_v37, %v1578_v35  ;;  %v1484_v55 = vsel %vm1228_vm12, %v918_v40, %v1356_v47  ;;  %v1516_v56 = vsel %vm1260_vm13, %v998_v41, %v1388_v48  ;;  %v2318_v40 = vld [vmem:[%s2867_s26 + $0x68] sm:$0xff] }
  0xcc   : > { %v2334_v41 = vld [vmem:[%s2867_s26 + $0xe8] sm:$0xff] }
  0xcd   : > { %2724 = vst [vmem:[%s2957_s4 + $0x110] sm:$0xff] %v2544_v38   ;;  %v1077_v42 = vpop.f32.mrf.mxu2  ;;  %v1157_v43 = vpop.f32.mrf.mxu3  ;;  %v2350_v48 = vld [vmem:[%s2867_s26 + $0x168] sm:$0xff] }
  0xce   : > { %2740 = vst [vmem:[%s2957_s4 + $0x190] sm:$0xff] %v2624_v39   ;;  %v919_v44 = vpop.f32.mrf.mxu0  ;;  %v999_v45 = vpop.f32.mrf.mxu1  ;;  %v1078_v51 = vadd.f32 %v2940_v46, %v1077_v42  ;;  %v1158_v54 = vadd.f32 %v2940_v46, %v1157_v43 }
  0xcf   : > { %v920_v49 = vadd.f32 %v2940_v46, %v919_v44  ;;  %v1000_v50 = vadd.f32 %v2940_v46, %v999_v45 }
  0xd0   : > { %v1420_v61 = vmul.f32 0.2, %v1078_v51  ;;  %vm1292_vm0 = vcmp.ge.f32.partialorder %v1078_v51, 0.0  ;;  %v1452_v2 = vmul.f32 0.2, %v1158_v54  ;;  %vm1324_vm1 = vcmp.ge.f32.partialorder %v1158_v54, 0.0 }
  0xd1   : > { %vm1229_vm14 = vcmp.ge.f32.partialorder %v920_v49, 0.0  ;;  %v1357_v52 = vmul.f32 0.2, %v920_v49  ;;  %vm1261_vm15 = vcmp.ge.f32.partialorder %v1000_v50, 0.0  ;;  %v1389_v53 = vmul.f32 0.2, %v1000_v50 }
  0xd2   : > { %v1548_v11 = vsel %vm1292_vm0, %v1078_v51, %v1420_v61  ;;  %v1580_v12 = vsel %vm1324_vm1, %v1158_v54, %v1452_v2 }
  0xd3   : > { %v1485_v57 = vsel %vm1229_vm14, %v920_v49, %v1357_v52  ;;  %v1517_v58 = vsel %vm1261_vm15, %v1000_v50, %v1389_v53  ;;  %v2366_v49 = vld [vmem:[%s2867_s26 + $0x1e8] sm:$0xff] }
  0xd4   : > { %v2389_v59 = vpack.c.bf16 %v1485_v57, %v1484_v55  ;;  %v2469_v60 = vpack.c.bf16 %v1517_v58, %v1516_v56 }
  0xd5   : > { %v1079_v62 = vpop.f32.mrf.mxu2  ;;  %v1159_v63 = vpop.f32.mrf.mxu3 }
  0xd6   : > { %2693 = vst [vmem:[%s2957_s4 + $0x18] sm:$0xff] %v2389_v59   ;;  %v1080_v3 = vadd.f32 %v2940_v46, %v1079_v62  ;;  %v1160_v4 = vadd.f32 %v2940_v46, %v1159_v63  ;;  %v922_v5 = vpop.f32.mrf.mxu0  ;;  %v1002_v6 = vpop.f32.mrf.mxu1 }
  0xd7   : > { %2709 = vst [vmem:[%s2957_s4 + $0x98] sm:$0xff] %v2469_v60   ;;  %v923_v17 = vadd.f32 %v2940_v46, %v922_v5  ;;  %v1003_v18 = vadd.f32 %v2940_v46, %v1002_v6 }
  0xd8   : > { %vm1293_vm3 = vcmp.ge.f32.partialorder %v1080_v3, 0.0  ;;  %v1421_v9 = vmul.f32 0.2, %v1080_v3  ;;  %vm1325_vm4 = vcmp.ge.f32.partialorder %v1160_v4, 0.0  ;;  %v1453_v10 = vmul.f32 0.2, %v1160_v4 }
  0xd9   : > { %2251 = vmatmul.msk.bf16.gmra.mxu0 %vm693_vm2, %v2317_v0  ;;  %2267 = vmatmul.msk.bf16.gmra.mxu1 %vm693_vm2, %v2333_v1  ;;  %v1358_v23 = vmul.f32 0.2, %v923_v17  ;;  %v1390_v24 = vmul.f32 0.2, %v1003_v18  ;;  %vm1230_vm5 = vcmp.ge.f32.partialorder %v923_v17, 0.0  ;;  %vm1262_vm6 = vcmp.ge.f32.partialorder %v1003_v18, 0.0 }
  0xda   : > { %v1549_v13 = vsel %vm1293_vm3, %v1080_v3, %v1421_v9  ;;  %v1581_v14 = vsel %vm1325_vm4, %v1160_v4, %v1453_v10  ;;  %2283 = vmatmul.msk.bf16.gmra.mxu2 %vm693_vm2, %v2349_v7  ;;  %2299 = vmatmul.msk.bf16.gmra.mxu3 %vm693_vm2, %v2365_v8 }
  0xdb   : > { %v2549_v15 = vpack.c.bf16 %v1549_v13, %v1548_v11  ;;  %v2629_v16 = vpack.c.bf16 %v1581_v14, %v1580_v12  ;;  %v1486_v31 = vsel %vm1230_vm5, %v923_v17, %v1358_v23  ;;  %v1518_v32 = vsel %vm1262_vm6, %v1003_v18, %v1390_v24  ;;  %v2319_v17 = vld [vmem:[%s2867_s26 + $0x70] sm:$0xff] }
  0xdc   : > { %v2335_v18 = vld [vmem:[%s2867_s26 + $0xf0] sm:$0xff] }
  0xdd   : > { %2725 = vst [vmem:[%s2957_s4 + $0x118] sm:$0xff] %v2549_v15   ;;  %v1082_v19 = vpop.f32.mrf.mxu2  ;;  %v1162_v20 = vpop.f32.mrf.mxu3  ;;  %v2351_v24 = vld [vmem:[%s2867_s26 + $0x170] sm:$0xff] }
  0xde   : > { %2741 = vst [vmem:[%s2957_s4 + $0x198] sm:$0xff] %v2629_v16   ;;  %v924_v21 = vpop.f32.mrf.mxu0  ;;  %v1004_v22 = vpop.f32.mrf.mxu1  ;;  %v1083_v27 = vadd.f32 %v2940_v46, %v1082_v19  ;;  %v1163_v30 = vadd.f32 %v2940_v46, %v1162_v20 }
  0xdf   : > { %v925_v25 = vadd.f32 %v2940_v46, %v924_v21  ;;  %v1005_v26 = vadd.f32 %v2940_v46, %v1004_v22 }
  0xe0   : > { %v1422_v37 = vmul.f32 0.2, %v1083_v27  ;;  %vm1294_vm9 = vcmp.ge.f32.partialorder %v1083_v27, 0.0  ;;  %v1454_v42 = vmul.f32 0.2, %v1163_v30  ;;  %vm1326_vm10 = vcmp.ge.f32.partialorder %v1163_v30, 0.0 }
  0xe1   : > { %vm1231_vm7 = vcmp.ge.f32.partialorder %v925_v25, 0.0  ;;  %v1359_v28 = vmul.f32 0.2, %v925_v25  ;;  %vm1263_vm8 = vcmp.ge.f32.partialorder %v1005_v26, 0.0  ;;  %v1391_v29 = vmul.f32 0.2, %v1005_v26 }
  0xe2   : > { %v1550_v52 = vsel %vm1294_vm9, %v1083_v27, %v1422_v37  ;;  %v1582_v53 = vsel %vm1326_vm10, %v1163_v30, %v1454_v42 }
  0xe3   : > { %v1487_v33 = vsel %vm1231_vm7, %v925_v25, %v1359_v28  ;;  %v1519_v34 = vsel %vm1263_vm8, %v1005_v26, %v1391_v29  ;;  %v2367_v25 = vld [vmem:[%s2867_s26 + $0x1f0] sm:$0xff] }
  0xe4   : > { %v2394_v35 = vpack.c.bf16 %v1487_v33, %v1486_v31  ;;  %v2474_v36 = vpack.c.bf16 %v1519_v34, %v1518_v32 }
  0xe5   : > { %v1084_v38 = vpop.f32.mrf.mxu2  ;;  %v1164_v39 = vpop.f32.mrf.mxu3 }
  0xe6   : > { %2694 = vst [vmem:[%s2957_s4 + $0x20] sm:$0xff] %v2394_v35   ;;  %v1085_v43 = vadd.f32 %v2940_v46, %v1084_v38  ;;  %v1165_v44 = vadd.f32 %v2940_v46, %v1164_v39  ;;  %v927_v45 = vpop.f32.mrf.mxu0  ;;  %v1007_v47 = vpop.f32.mrf.mxu1 }
  0xe7   : > { %2710 = vst [vmem:[%s2957_s4 + $0xa0] sm:$0xff] %v2474_v36   ;;  %v928_v58 = vadd.f32 %v2940_v46, %v927_v45  ;;  %v1008_v59 = vadd.f32 %v2940_v46, %v1007_v47 }
  0xe8   : > { %vm1295_vm11 = vcmp.ge.f32.partialorder %v1085_v43, 0.0  ;;  %v1423_v50 = vmul.f32 0.2, %v1085_v43  ;;  %vm1327_vm12 = vcmp.ge.f32.partialorder %v1165_v44, 0.0  ;;  %v1455_v51 = vmul.f32 0.2, %v1165_v44 }
  0xe9   : > { %2252 = vmatmul.msk.bf16.gmra.mxu0 %vm693_vm2, %v2318_v40  ;;  %2268 = vmatmul.msk.bf16.gmra.mxu1 %vm693_vm2, %v2334_v41  ;;  %v1360_v0 = vmul.f32 0.2, %v928_v58  ;;  %v1392_v1 = vmul.f32 0.2, %v1008_v59  ;;  %vm1232_vm13 = vcmp.ge.f32.partialorder %v928_v58, 0.0  ;;  %vm1264_vm14 = vcmp.ge.f32.partialorder %v1008_v59, 0.0 }
  0xea   : > { %v1551_v54 = vsel %vm1295_vm11, %v1085_v43, %v1423_v50  ;;  %v1583_v55 = vsel %vm1327_vm12, %v1165_v44, %v1455_v51  ;;  %2284 = vmatmul.msk.bf16.gmra.mxu2 %vm693_vm2, %v2350_v48  ;;  %2300 = vmatmul.msk.bf16.gmra.mxu3 %vm693_vm2, %v2366_v49 }
  0xeb   : > { %v2554_v56 = vpack.c.bf16 %v1551_v54, %v1550_v52  ;;  %v2634_v57 = vpack.c.bf16 %v1583_v55, %v1582_v53  ;;  %v1488_v8 = vsel %vm1232_vm13, %v928_v58, %v1360_v0  ;;  %v1520_v9 = vsel %vm1264_vm14, %v1008_v59, %v1392_v1  ;;  %v2320_v58 = vld [vmem:[%s2867_s26 + $0x78] sm:$0xff] }
  0xec   : > { %v2336_v59 = vld [vmem:[%s2867_s26 + $0xf8] sm:$0xff] }
  0xed   : > { %2726 = vst [vmem:[%s2957_s4 + $0x120] sm:$0xff] %v2554_v56   ;;  %v1087_v60 = vpop.f32.mrf.mxu2  ;;  %v1167_v61 = vpop.f32.mrf.mxu3  ;;  %v2352_v1 = vld [vmem:[%s2867_s26 + $0x178] sm:$0xff] }
  0xee   : > { %2742 = vst [vmem:[%s2957_s4 + $0x1a0] sm:$0xff] %v2634_v57   ;;  %v929_v62 = vpop.f32.mrf.mxu0  ;;  %v1009_v63 = vpop.f32.mrf.mxu1  ;;  %v1088_v4 = vadd.f32 %v2940_v46, %v1087_v60  ;;  %v1168_v7 = vadd.f32 %v2940_v46, %v1167_v61 }
  0xef   : > { %v930_v2 = vadd.f32 %v2940_v46, %v929_v62  ;;  %v1010_v3 = vadd.f32 %v2940_v46, %v1009_v63 }
  0xf0   : > { %v1424_v14 = vmul.f32 0.2, %v1088_v4  ;;  %vm1296_vm1 = vcmp.ge.f32.partialorder %v1088_v4, 0.0  ;;  %v1456_v19 = vmul.f32 0.2, %v1168_v7  ;;  %vm1328_vm3 = vcmp.ge.f32.partialorder %v1168_v7, 0.0 }
  0xf1   : > { %vm1233_vm15 = vcmp.ge.f32.partialorder %v930_v2, 0.0  ;;  %v1361_v5 = vmul.f32 0.2, %v930_v2  ;;  %vm1265_vm0 = vcmp.ge.f32.partialorder %v1010_v3, 0.0  ;;  %v1393_v6 = vmul.f32 0.2, %v1010_v3 }
  0xf2   : > { %v1552_v28 = vsel %vm1296_vm1, %v1088_v4, %v1424_v14  ;;  %v1584_v29 = vsel %vm1328_vm3, %v1168_v7, %v1456_v19 }
  0xf3   : > { %v1489_v10 = vsel %vm1233_vm15, %v930_v2, %v1361_v5  ;;  %v1521_v11 = vsel %vm1265_vm0, %v1010_v3, %v1393_v6  ;;  %v2368_v2 = vld [vmem:[%s2867_s26 + $0x1f8] sm:$0xff] }
  0xf4   : > { %v2399_v12 = vpack.c.bf16 %v1489_v10, %v1488_v8  ;;  %v2479_v13 = vpack.c.bf16 %v1521_v11, %v1520_v9 }
  0xf5   : > { %v1089_v15 = vpop.f32.mrf.mxu2  ;;  %v1169_v16 = vpop.f32.mrf.mxu3 }
  0xf6   : > { %2695 = vst [vmem:[%s2957_s4 + $0x28] sm:$0xff] %v2399_v12   ;;  %v1090_v20 = vadd.f32 %v2940_v46, %v1089_v15  ;;  %v1170_v21 = vadd.f32 %v2940_v46, %v1169_v16  ;;  %v932_v22 = vpop.f32.mrf.mxu0  ;;  %v1012_v23 = vpop.f32.mrf.mxu1 }
  0xf7   : > { %2711 = vst [vmem:[%s2957_s4 + $0xa8] sm:$0xff] %v2479_v13   ;;  %v933_v34 = vadd.f32 %v2940_v46, %v932_v22  ;;  %v1013_v35 = vadd.f32 %v2940_v46, %v1012_v23 }
  0xf8   : > { %vm1297_vm4 = vcmp.ge.f32.partialorder %v1090_v20, 0.0  ;;  %v1425_v26 = vmul.f32 0.2, %v1090_v20  ;;  %vm1329_vm5 = vcmp.ge.f32.partialorder %v1170_v21, 0.0  ;;  %v1457_v27 = vmul.f32 0.2, %v1170_v21 }
  0xf9   : > { %2253 = vmatmul.msk.bf16.gmra.mxu0 %vm693_vm2, %v2319_v17  ;;  %2269 = vmatmul.msk.bf16.gmra.mxu1 %vm693_vm2, %v2335_v18  ;;  %v1362_v40 = vmul.f32 0.2, %v933_v34  ;;  %v1394_v41 = vmul.f32 0.2, %v1013_v35  ;;  %vm1234_vm6 = vcmp.ge.f32.partialorder %v933_v34, 0.0  ;;  %vm1266_vm7 = vcmp.ge.f32.partialorder %v1013_v35, 0.0 }
  0xfa   : > { %v1553_v30 = vsel %vm1297_vm4, %v1090_v20, %v1425_v26  ;;  %v1585_v31 = vsel %vm1329_vm5, %v1170_v21, %v1457_v27  ;;  %2285 = vmatmul.msk.bf16.gmra.mxu2 %vm693_vm2, %v2351_v24  ;;  %2301 = vmatmul.msk.bf16.gmra.mxu3 %vm693_vm2, %v2367_v25 }
  0xfb   : > { %v2559_v32 = vpack.c.bf16 %v1553_v30, %v1552_v28  ;;  %v2639_v33 = vpack.c.bf16 %v1585_v31, %v1584_v29  ;;  %v1490_v49 = vsel %vm1234_vm6, %v933_v34, %v1362_v40  ;;  %v1522_v50 = vsel %vm1266_vm7, %v1013_v35, %v1394_v41 }
  0xfd   : > { %2727 = vst [vmem:[%s2957_s4 + $0x128] sm:$0xff] %v2559_v32   ;;  %v1092_v36 = vpop.f32.mrf.mxu2  ;;  %v1172_v37 = vpop.f32.mrf.mxu3 }
  0xfe   : > { %2743 = vst [vmem:[%s2957_s4 + $0x1a8] sm:$0xff] %v2639_v33   ;;  %v934_v38 = vpop.f32.mrf.mxu0  ;;  %v1014_v39 = vpop.f32.mrf.mxu1  ;;  %v1093_v44 = vadd.f32 %v2940_v46, %v1092_v36  ;;  %v1173_v48 = vadd.f32 %v2940_v46, %v1172_v37 }
  0xff   : > { %v935_v42 = vadd.f32 %v2940_v46, %v934_v38  ;;  %v1015_v43 = vadd.f32 %v2940_v46, %v1014_v39 }
 0x100   : > { %v1426_v55 = vmul.f32 0.2, %v1093_v44  ;;  %vm1298_vm10 = vcmp.ge.f32.partialorder %v1093_v44, 0.0  ;;  %v1458_v60 = vmul.f32 0.2, %v1173_v48  ;;  %vm1330_vm11 = vcmp.ge.f32.partialorder %v1173_v48, 0.0 }
 0x101   : > { %vm1235_vm8 = vcmp.ge.f32.partialorder %v935_v42, 0.0  ;;  %v1363_v45 = vmul.f32 0.2, %v935_v42  ;;  %vm1267_vm9 = vcmp.ge.f32.partialorder %v1015_v43, 0.0  ;;  %v1395_v47 = vmul.f32 0.2, %v1015_v43 }
 0x102   : > { %v1554_v5 = vsel %vm1298_vm10, %v1093_v44, %v1426_v55  ;;  %v1586_v6 = vsel %vm1330_vm11, %v1173_v48, %v1458_v60 }
 0x103   : > { %v1491_v51 = vsel %vm1235_vm8, %v935_v42, %v1363_v45  ;;  %v1523_v52 = vsel %vm1267_vm9, %v1015_v43, %v1395_v47 }
 0x104   : > { %v2404_v53 = vpack.c.bf16 %v1491_v51, %v1490_v49  ;;  %v2484_v54 = vpack.c.bf16 %v1523_v52, %v1522_v50 }
 0x105   : > { %v1094_v56 = vpop.f32.mrf.mxu2  ;;  %v1174_v57 = vpop.f32.mrf.mxu3 }
 0x106   : > { %2696 = vst [vmem:[%s2957_s4 + $0x30] sm:$0xff] %v2404_v53   ;;  %v1095_v61 = vadd.f32 %v2940_v46, %v1094_v56  ;;  %v1175_v62 = vadd.f32 %v2940_v46, %v1174_v57  ;;  %v937_v63 = vpop.f32.mrf.mxu0  ;;  %v1017_v0 = vpop.f32.mrf.mxu1 }
 0x107   : > { %2712 = vst [vmem:[%s2957_s4 + $0xb0] sm:$0xff] %v2484_v54   ;;  %v938_v11 = vadd.f32 %v2940_v46, %v937_v63  ;;  %v1018_v12 = vadd.f32 %v2940_v46, %v1017_v0 }
 0x108   : > { %vm1299_vm12 = vcmp.ge.f32.partialorder %v1095_v61, 0.0  ;;  %v1427_v3 = vmul.f32 0.2, %v1095_v61  ;;  %vm1331_vm13 = vcmp.ge.f32.partialorder %v1175_v62, 0.0  ;;  %v1459_v4 = vmul.f32 0.2, %v1175_v62 }
 0x109   : > { %2254 = vmatmul.msk.bf16.gmra.mxu0 %vm693_vm2, %v2320_v58  ;;  %2270 = vmatmul.msk.bf16.gmra.mxu1 %vm693_vm2, %v2336_v59  ;;  %v1364_v17 = vmul.f32 0.2, %v938_v11  ;;  %v1396_v18 = vmul.f32 0.2, %v1018_v12  ;;  %vm1236_vm14 = vcmp.ge.f32.partialorder %v938_v11, 0.0 }
 0x10a   : > { %v1555_v7 = vsel %vm1299_vm12, %v1095_v61, %v1427_v3  ;;  %v1587_v8 = vsel %vm1331_vm13, %v1175_v62, %v1459_v4  ;;  %2286 = vmatmul.msk.bf16.gmra.mxu2 %vm693_vm2, %v2352_v1  ;;  %2302 = vmatmul.msk.bf16.gmra.mxu3 %vm693_vm2, %v2368_v2  ;;  %vm1268_vm2 = vcmp.ge.f32.partialorder %v1018_v12, 0.0 }
 0x10b   : > { %v2564_v9 = vpack.c.bf16 %v1555_v7, %v1554_v5  ;;  %v2644_v10 = vpack.c.bf16 %v1587_v8, %v1586_v6  ;;  %v1492_v25 = vsel %vm1236_vm14, %v938_v11, %v1364_v17  ;;  %v1524_v26 = vsel %vm1268_vm2, %v1018_v12, %v1396_v18 }
 0x10d   : > { %2728 = vst [vmem:[%s2957_s4 + $0x130] sm:$0xff] %v2564_v9   ;;  %v1097_v13 = vpop.f32.mrf.mxu2  ;;  %v1177_v14 = vpop.f32.mrf.mxu3 }
 0x10e   : > { %2744 = vst [vmem:[%s2957_s4 + $0x1b0] sm:$0xff] %v2644_v10   ;;  %v939_v15 = vpop.f32.mrf.mxu0  ;;  %v1019_v16 = vpop.f32.mrf.mxu1  ;;  %v1098_v23 = vadd.f32 %v2940_v46, %v1097_v13  ;;  %v1178_v24 = vadd.f32 %v2940_v46, %v1177_v14 }
 0x10f   : > { %v940_v19 = vadd.f32 %v2940_v46, %v939_v15  ;;  %v1020_v20 = vadd.f32 %v2940_v46, %v1019_v16 }
 0x110   : > { %v1428_v33 = vmul.f32 0.2, %v1098_v23  ;;  %v1460_v34 = vmul.f32 0.2, %v1178_v24  ;;  %vm1300_vm1 = vcmp.ge.f32.partialorder %v1098_v23, 0.0  ;;  %vm1332_vm3 = vcmp.ge.f32.partialorder %v1178_v24, 0.0 }
 0x111   : > { %vm1237_vm15 = vcmp.ge.f32.partialorder %v940_v19, 0.0  ;;  %v1365_v21 = vmul.f32 0.2, %v940_v19  ;;  %vm1269_vm0 = vcmp.ge.f32.partialorder %v1020_v20, 0.0  ;;  %v1397_v22 = vmul.f32 0.2, %v1020_v20 }
 0x112   : > { %v1556_v41 = vsel %vm1300_vm1, %v1098_v23, %v1428_v33  ;;  %v1588_v42 = vsel %vm1332_vm3, %v1178_v24, %v1460_v34 }
 0x113   : > { %v1493_v27 = vsel %vm1237_vm15, %v940_v19, %v1365_v21  ;;  %v1525_v28 = vsel %vm1269_vm0, %v1020_v20, %v1397_v22 }
 0x114   : > { %v2409_v29 = vpack.c.bf16 %v1493_v27, %v1492_v25  ;;  %v2489_v30 = vpack.c.bf16 %v1525_v28, %v1524_v26 }
 0x115   : > { %v1099_v31 = vpop.f32.mrf.mxu2  ;;  %v1179_v32 = vpop.f32.mrf.mxu3 }
 0x116   : > { %2697 = vst [vmem:[%s2957_s4 + $0x38] sm:$0xff] %v2409_v29   ;;  %v1100_v35 = vadd.f32 %v2940_v46, %v1099_v31  ;;  %v1180_v36 = vadd.f32 %v2940_v46, %v1179_v32  ;;  %v942_v37 = vpop.f32.mrf.mxu0  ;;  %v1022_v38 = vpop.f32.mrf.mxu1 }
 0x117   : > { %2713 = vst [vmem:[%s2957_s4 + $0xb8] sm:$0xff] %v2489_v30   ;;  %v943_v48 = vadd.f32 %v2940_v46, %v942_v37  ;;  %v1023_v49 = vadd.f32 %v2940_v46, %v1022_v38 }
 0x118   : > { %vm1301_vm4 = vcmp.ge.f32.partialorder %v1100_v35, 0.0  ;;  %v1429_v39 = vmul.f32 0.2, %v1100_v35  ;;  %vm1333_vm5 = vcmp.ge.f32.partialorder %v1180_v36, 0.0  ;;  %v1461_v40 = vmul.f32 0.2, %v1180_v36 }
 0x119   : > { %v1366_v54 = vmul.f32 0.2, %v943_v48  ;;  %v1398_v55 = vmul.f32 0.2, %v1023_v49  ;;  %vm1238_vm6 = vcmp.ge.f32.partialorder %v943_v48, 0.0  ;;  %vm1270_vm7 = vcmp.ge.f32.partialorder %v1023_v49, 0.0 }
 0x11a   : > { %v1557_v43 = vsel %vm1301_vm4, %v1100_v35, %v1429_v39  ;;  %v1589_v44 = vsel %vm1333_vm5, %v1180_v36, %v1461_v40 }
 0x11b   : > { %v2569_v45 = vpack.c.bf16 %v1557_v43, %v1556_v41  ;;  %v2649_v47 = vpack.c.bf16 %v1589_v44, %v1588_v42  ;;  %v1494_v62 = vsel %vm1238_vm6, %v943_v48, %v1366_v54  ;;  %v1526_v63 = vsel %vm1270_vm7, %v1023_v49, %v1398_v55  ;;  %v3127_v44 = vld [vmem:[%s3217_s2] ss:$0 sm:$0xff] }
 0x11d   : > { %2729 = vst [vmem:[%s2957_s4 + $0x138] sm:$0xff] %v2569_v45   ;;  %v1102_v50 = vpop.f32.mrf.mxu2  ;;  %v1182_v51 = vpop.f32.mrf.mxu3 }
 0x11e   : > { %2745 = vst [vmem:[%s2957_s4 + $0x1b8] sm:$0xff] %v2649_v47   ;;  %v944_v52 = vpop.f32.mrf.mxu0  ;;  %v1024_v53 = vpop.f32.mrf.mxu1  ;;  %v1103_v60 = vadd.f32 %v2940_v46, %v1102_v50  ;;  %v1183_v61 = vadd.f32 %v2940_v46, %v1182_v51 }
 0x11f   : > { %v945_v56 = vadd.f32 %v2940_v46, %v944_v52  ;;  %v1025_v57 = vadd.f32 %v2940_v46, %v1024_v53 }
 0x120   : > { %v1430_v6 = vmul.f32 0.2, %v1103_v60  ;;  %v1462_v7 = vmul.f32 0.2, %v1183_v61  ;;  %vm1302_vm10 = vcmp.ge.f32.partialorder %v1103_v60, 0.0  ;;  %vm1334_vm11 = vcmp.ge.f32.partialorder %v1183_v61, 0.0 }
 0x121   : > { %vm1239_vm8 = vcmp.ge.f32.partialorder %v945_v56, 0.0  ;;  %v1367_v58 = vmul.f32 0.2, %v945_v56  ;;  %vm1271_vm9 = vcmp.ge.f32.partialorder %v1025_v57, 0.0  ;;  %v1399_v59 = vmul.f32 0.2, %v1025_v57 }
 0x122   : > { %v1558_v14 = vsel %vm1302_vm10, %v1103_v60, %v1430_v6  ;;  %v1590_v15 = vsel %vm1334_vm11, %v1183_v61, %v1462_v7 }
 0x123   : > { %v1495_v0 = vsel %vm1239_vm8, %v945_v56, %v1367_v58  ;;  %v1527_v1 = vsel %vm1271_vm9, %v1025_v57, %v1399_v59 }
 0x124   : > { %v2414_v2 = vpack.c.bf16 %v1495_v0, %v1494_v62  ;;  %v2494_v3 = vpack.c.bf16 %v1527_v1, %v1526_v63 }
 0x125   : > { %v1104_v4 = vpop.f32.mrf.mxu2  ;;  %v1184_v5 = vpop.f32.mrf.mxu3 }
 0x126   : > { %2698 = vst [vmem:[%s2957_s4 + $0x40] sm:$0xff] %v2414_v2   ;;  %v1105_v8 = vadd.f32 %v2940_v46, %v1104_v4  ;;  %v1185_v9 = vadd.f32 %v2940_v46, %v1184_v5  ;;  %v947_v10 = vpop.f32.mrf.mxu0  ;;  %v1027_v11 = vpop.f32.mrf.mxu1 }
 0x127   : > { %2714 = vst [vmem:[%s2957_s4 + $0xc0] sm:$0xff] %v2494_v3   ;;  %v948_v20 = vadd.f32 %v2940_v46, %v947_v10  ;;  %v1028_v21 = vadd.f32 %v2940_v46, %v1027_v11 }
 0x128   : > { %vm1303_vm12 = vcmp.ge.f32.partialorder %v1105_v8, 0.0  ;;  %v1431_v12 = vmul.f32 0.2, %v1105_v8  ;;  %vm1335_vm13 = vcmp.ge.f32.partialorder %v1185_v9, 0.0  ;;  %v1463_v13 = vmul.f32 0.2, %v1185_v9 }
 0x129   : > { %v1368_v26 = vmul.f32 0.2, %v948_v20  ;;  %v1400_v27 = vmul.f32 0.2, %v1028_v21  ;;  %vm1240_vm14 = vcmp.ge.f32.partialorder %v948_v20, 0.0  ;;  %vm1272_vm2 = vcmp.ge.f32.partialorder %v1028_v21, 0.0 }
 0x12a   : > { %v1559_v16 = vsel %vm1303_vm12, %v1105_v8, %v1431_v12  ;;  %v1591_v17 = vsel %vm1335_vm13, %v1185_v9, %v1463_v13 }
 0x12b   : > { %v2574_v18 = vpack.c.bf16 %v1559_v16, %v1558_v14  ;;  %v2654_v19 = vpack.c.bf16 %v1591_v17, %v1590_v15  ;;  %v1496_v34 = vsel %vm1240_vm14, %v948_v20, %v1368_v26  ;;  %v1528_v35 = vsel %vm1272_vm2, %v1028_v21, %v1400_v27 }
 0x12d   : > { %2730 = vst [vmem:[%s2957_s4 + $0x140] sm:$0xff] %v2574_v18   ;;  %v1107_v22 = vpop.f32.mrf.mxu2  ;;  %v1187_v23 = vpop.f32.mrf.mxu3 }
 0x12e   : > { %2746 = vst [vmem:[%s2957_s4 + $0x1c0] sm:$0xff] %v2654_v19   ;;  %v949_v24 = vpop.f32.mrf.mxu0  ;;  %v1029_v25 = vpop.f32.mrf.mxu1  ;;  %v1108_v32 = vadd.f32 %v2940_v46, %v1107_v22  ;;  %v1188_v33 = vadd.f32 %v2940_v46, %v1187_v23 }
 0x12f   : > { %v950_v28 = vadd.f32 %v2940_v46, %v949_v24  ;;  %v1030_v29 = vadd.f32 %v2940_v46, %v1029_v25 }
 0x130   : > { %v1432_v42 = vmul.f32 0.2, %v1108_v32  ;;  %v1464_v43 = vmul.f32 0.2, %v1188_v33  ;;  %vm1304_vm1 = vcmp.ge.f32.partialorder %v1108_v32, 0.0  ;;  %vm1336_vm3 = vcmp.ge.f32.partialorder %v1188_v33, 0.0 }
 0x131   : > { %vm1241_vm15 = vcmp.ge.f32.partialorder %v950_v28, 0.0  ;;  %v1369_v30 = vmul.f32 0.2, %v950_v28  ;;  %vm1273_vm0 = vcmp.ge.f32.partialorder %v1030_v29, 0.0  ;;  %v1401_v31 = vmul.f32 0.2, %v1030_v29 }
 0x132   : > { %v1560_v51 = vsel %vm1304_vm1, %v1108_v32, %v1432_v42  ;;  %v1592_v52 = vsel %vm1336_vm3, %v1188_v33, %v1464_v43 }
 0x133   : > { %v1497_v36 = vsel %vm1241_vm15, %v950_v28, %v1369_v30  ;;  %v1529_v37 = vsel %vm1273_vm0, %v1030_v29, %v1401_v31 }
 0x134   : > { %v2419_v38 = vpack.c.bf16 %v1497_v36, %v1496_v34  ;;  %v2499_v39 = vpack.c.bf16 %v1529_v37, %v1528_v35 }
 0x135   : > { %v1109_v40 = vpop.f32.mrf.mxu2  ;;  %v1189_v41 = vpop.f32.mrf.mxu3 }
 0x136   : > { %2699 = vst [vmem:[%s2957_s4 + $0x48] sm:$0xff] %v2419_v38   ;;  %v1110_v45 = vadd.f32 %v3127_v44, %v1109_v40  ;;  %v1190_v46 = vadd.f32 %v3127_v44, %v1189_v41  ;;  %v952_v47 = vpop.f32.mrf.mxu0  ;;  %v1032_v48 = vpop.f32.mrf.mxu1 }
 0x137   : > { %2715 = vst [vmem:[%s2957_s4 + $0xc8] sm:$0xff] %v2499_v39   ;;  %v953_v57 = vadd.f32 %v3127_v44, %v952_v47  ;;  %v1033_v58 = vadd.f32 %v3127_v44, %v1032_v48 }
 0x138   : > { %vm1305_vm4 = vcmp.ge.f32.partialorder %v1110_v45, 0.0  ;;  %v1433_v49 = vmul.f32 0.2, %v1110_v45  ;;  %vm1337_vm5 = vcmp.ge.f32.partialorder %v1190_v46, 0.0  ;;  %v1465_v50 = vmul.f32 0.2, %v1190_v46 }
 0x139   : > { %v1370_v63 = vmul.f32 0.2, %v953_v57  ;;  %v1402_v0 = vmul.f32 0.2, %v1033_v58  ;;  %vm1242_vm6 = vcmp.ge.f32.partialorder %v953_v57, 0.0  ;;  %vm1274_vm7 = vcmp.ge.f32.partialorder %v1033_v58, 0.0 }
 0x13a   : > { %v1561_v53 = vsel %vm1305_vm4, %v1110_v45, %v1433_v49  ;;  %v1593_v54 = vsel %vm1337_vm5, %v1190_v46, %v1465_v50 }
 0x13b   : > { %v2579_v55 = vpack.c.bf16 %v1561_v53, %v1560_v51  ;;  %v2659_v56 = vpack.c.bf16 %v1593_v54, %v1592_v52  ;;  %v1498_v7 = vsel %vm1242_vm6, %v953_v57, %v1370_v63  ;;  %v1530_v8 = vsel %vm1274_vm7, %v1033_v58, %v1402_v0 }
 0x13d   : > { %2731 = vst [vmem:[%s2957_s4 + $0x148] sm:$0xff] %v2579_v55   ;;  %v1112_v59 = vpop.f32.mrf.mxu2  ;;  %v1192_v60 = vpop.f32.mrf.mxu3 }
 0x13e   : > { %2747 = vst [vmem:[%s2957_s4 + $0x1c8] sm:$0xff] %v2659_v56   ;;  %v954_v61 = vpop.f32.mrf.mxu0  ;;  %v1034_v62 = vpop.f32.mrf.mxu1  ;;  %v1113_v5 = vadd.f32 %v3127_v44, %v1112_v59  ;;  %v1193_v6 = vadd.f32 %v3127_v44, %v1192_v60 }
 0x13f   : > { %v955_v1 = vadd.f32 %v3127_v44, %v954_v61  ;;  %v1035_v2 = vadd.f32 %v3127_v44, %v1034_v62 }
 0x140   : > { %v1434_v15 = vmul.f32 0.2, %v1113_v5  ;;  %v1466_v16 = vmul.f32 0.2, %v1193_v6  ;;  %vm1306_vm10 = vcmp.ge.f32.partialorder %v1113_v5, 0.0  ;;  %vm1338_vm11 = vcmp.ge.f32.partialorder %v1193_v6, 0.0 }
 0x141   : > { %vm1243_vm8 = vcmp.ge.f32.partialorder %v955_v1, 0.0  ;;  %v1371_v3 = vmul.f32 0.2, %v955_v1  ;;  %vm1275_vm9 = vcmp.ge.f32.partialorder %v1035_v2, 0.0  ;;  %v1403_v4 = vmul.f32 0.2, %v1035_v2 }
 0x142   : > { %v1562_v23 = vsel %vm1306_vm10, %v1113_v5, %v1434_v15  ;;  %v1594_v24 = vsel %vm1338_vm11, %v1193_v6, %v1466_v16 }
 0x143   : > { %v1499_v9 = vsel %vm1243_vm8, %v955_v1, %v1371_v3  ;;  %v1531_v10 = vsel %vm1275_vm9, %v1035_v2, %v1403_v4 }
 0x144   : > { %v2424_v11 = vpack.c.bf16 %v1499_v9, %v1498_v7  ;;  %v2504_v12 = vpack.c.bf16 %v1531_v10, %v1530_v8 }
 0x145   : > { %v1114_v13 = vpop.f32.mrf.mxu2  ;;  %v1194_v14 = vpop.f32.mrf.mxu3 }
 0x146   : > { %2700 = vst [vmem:[%s2957_s4 + $0x50] sm:$0xff] %v2424_v11   ;;  %v1115_v17 = vadd.f32 %v3127_v44, %v1114_v13  ;;  %v1195_v18 = vadd.f32 %v3127_v44, %v1194_v14  ;;  %v957_v19 = vpop.f32.mrf.mxu0  ;;  %v1037_v20 = vpop.f32.mrf.mxu1 }
 0x147   : > { %2716 = vst [vmem:[%s2957_s4 + $0xd0] sm:$0xff] %v2504_v12   ;;  %v958_v29 = vadd.f32 %v3127_v44, %v957_v19  ;;  %v1038_v30 = vadd.f32 %v3127_v44, %v1037_v20 }
 0x148   : > { %vm1307_vm12 = vcmp.ge.f32.partialorder %v1115_v17, 0.0  ;;  %v1435_v21 = vmul.f32 0.2, %v1115_v17  ;;  %vm1339_vm13 = vcmp.ge.f32.partialorder %v1195_v18, 0.0  ;;  %v1467_v22 = vmul.f32 0.2, %v1195_v18 }
 0x149   : > { %v1372_v35 = vmul.f32 0.2, %v958_v29  ;;  %v1404_v36 = vmul.f32 0.2, %v1038_v30  ;;  %vm1244_vm14 = vcmp.ge.f32.partialorder %v958_v29, 0.0  ;;  %vm1276_vm2 = vcmp.ge.f32.partialorder %v1038_v30, 0.0 }
 0x14a   : > { %v1563_v25 = vsel %vm1307_vm12, %v1115_v17, %v1435_v21  ;;  %v1595_v26 = vsel %vm1339_vm13, %v1195_v18, %v1467_v22 }
 0x14b   : > { %v2584_v27 = vpack.c.bf16 %v1563_v25, %v1562_v23  ;;  %v2664_v28 = vpack.c.bf16 %v1595_v26, %v1594_v24  ;;  %v1500_v43 = vsel %vm1244_vm14, %v958_v29, %v1372_v35  ;;  %v1532_v45 = vsel %vm1276_vm2, %v1038_v30, %v1404_v36 }
 0x14d   : > { %2732 = vst [vmem:[%s2957_s4 + $0x150] sm:$0xff] %v2584_v27   ;;  %v1117_v31 = vpop.f32.mrf.mxu2  ;;  %v1197_v32 = vpop.f32.mrf.mxu3 }
 0x14e   : > { %2748 = vst [vmem:[%s2957_s4 + $0x1d0] sm:$0xff] %v2664_v28   ;;  %v959_v33 = vpop.f32.mrf.mxu0  ;;  %v1039_v34 = vpop.f32.mrf.mxu1  ;;  %v1118_v41 = vadd.f32 %v3127_v44, %v1117_v31  ;;  %v1198_v42 = vadd.f32 %v3127_v44, %v1197_v32 }
 0x14f   : > { %v960_v37 = vadd.f32 %v3127_v44, %v959_v33  ;;  %v1040_v38 = vadd.f32 %v3127_v44, %v1039_v34 }
 0x150   : > { %v1436_v52 = vmul.f32 0.2, %v1118_v41  ;;  %v1468_v53 = vmul.f32 0.2, %v1198_v42  ;;  %vm1308_vm1 = vcmp.ge.f32.partialorder %v1118_v41, 0.0  ;;  %vm1340_vm3 = vcmp.ge.f32.partialorder %v1198_v42, 0.0 }
 0x151   : > { %vm1245_vm15 = vcmp.ge.f32.partialorder %v960_v37, 0.0  ;;  %v1373_v39 = vmul.f32 0.2, %v960_v37  ;;  %vm1277_vm0 = vcmp.ge.f32.partialorder %v1040_v38, 0.0  ;;  %v1405_v40 = vmul.f32 0.2, %v1040_v38 }
 0x152   : > { %v1564_v60 = vsel %vm1308_vm1, %v1118_v41, %v1436_v52  ;;  %v1596_v61 = vsel %vm1340_vm3, %v1198_v42, %v1468_v53 }
 0x153   : > { %v1501_v46 = vsel %vm1245_vm15, %v960_v37, %v1373_v39  ;;  %v1533_v47 = vsel %vm1277_vm0, %v1040_v38, %v1405_v40 }
 0x154   : > { %v2429_v48 = vpack.c.bf16 %v1501_v46, %v1500_v43  ;;  %v2509_v49 = vpack.c.bf16 %v1533_v47, %v1532_v45 }
 0x155   : > { %v1119_v50 = vpop.f32.mrf.mxu2  ;;  %v1199_v51 = vpop.f32.mrf.mxu3 }
 0x156   : > { %2701 = vst [vmem:[%s2957_s4 + $0x58] sm:$0xff] %v2429_v48   ;;  %v1120_v54 = vadd.f32 %v3127_v44, %v1119_v50  ;;  %v1200_v55 = vadd.f32 %v3127_v44, %v1199_v51  ;;  %v962_v56 = vpop.f32.mrf.mxu0  ;;  %v1042_v57 = vpop.f32.mrf.mxu1 }
 0x157   : > { %2717 = vst [vmem:[%s2957_s4 + $0xd8] sm:$0xff] %v2509_v49   ;;  %v963_v2 = vadd.f32 %v3127_v44, %v962_v56  ;;  %v1043_v3 = vadd.f32 %v3127_v44, %v1042_v57 }
 0x158   : > { %vm1309_vm4 = vcmp.ge.f32.partialorder %v1120_v54, 0.0  ;;  %v1437_v58 = vmul.f32 0.2, %v1120_v54  ;;  %vm1341_vm5 = vcmp.ge.f32.partialorder %v1200_v55, 0.0  ;;  %v1469_v59 = vmul.f32 0.2, %v1200_v55 }
 0x159   : > { %v1374_v8 = vmul.f32 0.2, %v963_v2  ;;  %v1406_v9 = vmul.f32 0.2, %v1043_v3  ;;  %vm1246_vm6 = vcmp.ge.f32.partialorder %v963_v2, 0.0  ;;  %vm1278_vm7 = vcmp.ge.f32.partialorder %v1043_v3, 0.0 }
 0x15a   : > { %v1565_v62 = vsel %vm1309_vm4, %v1120_v54, %v1437_v58  ;;  %v1597_v63 = vsel %vm1341_vm5, %v1200_v55, %v1469_v59 }
 0x15b   : > { %v2589_v0 = vpack.c.bf16 %v1565_v62, %v1564_v60  ;;  %v2669_v1 = vpack.c.bf16 %v1597_v63, %v1596_v61  ;;  %v1502_v16 = vsel %vm1246_vm6, %v963_v2, %v1374_v8  ;;  %v1534_v17 = vsel %vm1278_vm7, %v1043_v3, %v1406_v9 }
 0x15d   : > { %2733 = vst [vmem:[%s2957_s4 + $0x158] sm:$0xff] %v2589_v0   ;;  %v1122_v4 = vpop.f32.mrf.mxu2  ;;  %v1202_v5 = vpop.f32.mrf.mxu3 }
 0x15e   : > { %2749 = vst [vmem:[%s2957_s4 + $0x1d8] sm:$0xff] %v2669_v1   ;;  %v964_v6 = vpop.f32.mrf.mxu0  ;;  %v1044_v7 = vpop.f32.mrf.mxu1  ;;  %v1123_v14 = vadd.f32 %v3127_v44, %v1122_v4  ;;  %v1203_v15 = vadd.f32 %v3127_v44, %v1202_v5 }
 0x15f   : > { %v965_v10 = vadd.f32 %v3127_v44, %v964_v6  ;;  %v1045_v11 = vadd.f32 %v3127_v44, %v1044_v7 }
 0x160   : > { %v1438_v24 = vmul.f32 0.2, %v1123_v14  ;;  %v1470_v25 = vmul.f32 0.2, %v1203_v15  ;;  %vm1310_vm10 = vcmp.ge.f32.partialorder %v1123_v14, 0.0  ;;  %vm1342_vm11 = vcmp.ge.f32.partialorder %v1203_v15, 0.0 }
 0x161   : > { %vm1247_vm8 = vcmp.ge.f32.partialorder %v965_v10, 0.0  ;;  %v1375_v12 = vmul.f32 0.2, %v965_v10  ;;  %vm1279_vm9 = vcmp.ge.f32.partialorder %v1045_v11, 0.0  ;;  %v1407_v13 = vmul.f32 0.2, %v1045_v11 }
 0x162   : > { %v1566_v32 = vsel %vm1310_vm10, %v1123_v14, %v1438_v24  ;;  %v1598_v33 = vsel %vm1342_vm11, %v1203_v15, %v1470_v25 }
 0x163   : > { %v1503_v18 = vsel %vm1247_vm8, %v965_v10, %v1375_v12  ;;  %v1535_v19 = vsel %vm1279_vm9, %v1045_v11, %v1407_v13 }
 0x164   : > { %v2434_v20 = vpack.c.bf16 %v1503_v18, %v1502_v16  ;;  %v2514_v21 = vpack.c.bf16 %v1535_v19, %v1534_v17 }
 0x165   : > { %v1124_v22 = vpop.f32.mrf.mxu2  ;;  %v1204_v23 = vpop.f32.mrf.mxu3 }
 0x166   : > { %2702 = vst [vmem:[%s2957_s4 + $0x60] sm:$0xff] %v2434_v20   ;;  %v1125_v26 = vadd.f32 %v3127_v44, %v1124_v22  ;;  %v1205_v27 = vadd.f32 %v3127_v44, %v1204_v23  ;;  %v967_v28 = vpop.f32.mrf.mxu0  ;;  %v1047_v29 = vpop.f32.mrf.mxu1 }
 0x167   : > { %2718 = vst [vmem:[%s2957_s4 + $0xe0] sm:$0xff] %v2514_v21   ;;  %v968_v38 = vadd.f32 %v3127_v44, %v967_v28  ;;  %v1048_v39 = vadd.f32 %v3127_v44, %v1047_v29 }
 0x168   : > { %vm1311_vm12 = vcmp.ge.f32.partialorder %v1125_v26, 0.0  ;;  %v1439_v30 = vmul.f32 0.2, %v1125_v26  ;;  %vm1343_vm13 = vcmp.ge.f32.partialorder %v1205_v27, 0.0  ;;  %v1471_v31 = vmul.f32 0.2, %v1205_v27 }
 0x169   : > { %v1376_v45 = vmul.f32 0.2, %v968_v38  ;;  %v1408_v46 = vmul.f32 0.2, %v1048_v39  ;;  %vm1248_vm14 = vcmp.ge.f32.partialorder %v968_v38, 0.0  ;;  %vm1280_vm2 = vcmp.ge.f32.partialorder %v1048_v39, 0.0 }
 0x16a   : > { %v1567_v34 = vsel %vm1311_vm12, %v1125_v26, %v1439_v30  ;;  %v1599_v35 = vsel %vm1343_vm13, %v1205_v27, %v1471_v31 }
 0x16b   : > { %v2594_v36 = vpack.c.bf16 %v1567_v34, %v1566_v32  ;;  %v2674_v37 = vpack.c.bf16 %v1599_v35, %v1598_v33  ;;  %v1504_v53 = vsel %vm1248_vm14, %v968_v38, %v1376_v45  ;;  %v1536_v54 = vsel %vm1280_vm2, %v1048_v39, %v1408_v46 }
 0x16d   : > { %2734 = vst [vmem:[%s2957_s4 + $0x160] sm:$0xff] %v2594_v36   ;;  %v1127_v40 = vpop.f32.mrf.mxu2  ;;  %v1207_v41 = vpop.f32.mrf.mxu3 }
 0x16e   : > { %2750 = vst [vmem:[%s2957_s4 + $0x1e0] sm:$0xff] %v2674_v37   ;;  %v969_v42 = vpop.f32.mrf.mxu0  ;;  %v1049_v43 = vpop.f32.mrf.mxu1  ;;  %v1128_v51 = vadd.f32 %v3127_v44, %v1127_v40  ;;  %v1208_v52 = vadd.f32 %v3127_v44, %v1207_v41 }
 0x16f   : > { %v970_v47 = vadd.f32 %v3127_v44, %v969_v42  ;;  %v1050_v48 = vadd.f32 %v3127_v44, %v1049_v43 }
 0x170   : > { %v1440_v61 = vmul.f32 0.2, %v1128_v51  ;;  %v1472_v62 = vmul.f32 0.2, %v1208_v52  ;;  %vm1312_vm1 = vcmp.ge.f32.partialorder %v1128_v51, 0.0  ;;  %vm1344_vm3 = vcmp.ge.f32.partialorder %v1208_v52, 0.0 }
 0x171   : > { %vm1249_vm15 = vcmp.ge.f32.partialorder %v970_v47, 0.0  ;;  %v1377_v49 = vmul.f32 0.2, %v970_v47  ;;  %vm1281_vm0 = vcmp.ge.f32.partialorder %v1050_v48, 0.0  ;;  %v1409_v50 = vmul.f32 0.2, %v1050_v48 }
 0x172   : > { %v1568_v5 = vsel %vm1312_vm1, %v1128_v51, %v1440_v61  ;;  %v1600_v6 = vsel %vm1344_vm3, %v1208_v52, %v1472_v62 }
 0x173   : > { %v1505_v55 = vsel %vm1249_vm15, %v970_v47, %v1377_v49  ;;  %v1537_v56 = vsel %vm1281_vm0, %v1050_v48, %v1409_v50 }
 0x174   : > { %v2439_v57 = vpack.c.bf16 %v1505_v55, %v1504_v53  ;;  %v2519_v58 = vpack.c.bf16 %v1537_v56, %v1536_v54 }
 0x175   : > { %v1129_v59 = vpop.f32.mrf.mxu2  ;;  %v1209_v60 = vpop.f32.mrf.mxu3 }
 0x176   : > { %2703 = vst [vmem:[%s2957_s4 + $0x68] sm:$0xff] %v2439_v57   ;;  %v1130_v63 = vadd.f32 %v3127_v44, %v1129_v59  ;;  %v1210_v0 = vadd.f32 %v3127_v44, %v1209_v60  ;;  %v972_v1 = vpop.f32.mrf.mxu0  ;;  %v1052_v2 = vpop.f32.mrf.mxu1 }
 0x177   : > { %2719 = vst [vmem:[%s2957_s4 + $0xe8] sm:$0xff] %v2519_v58   ;;  %v973_v11 = vadd.f32 %v3127_v44, %v972_v1  ;;  %v1053_v12 = vadd.f32 %v3127_v44, %v1052_v2 }
 0x178   : > { %vm1313_vm4 = vcmp.ge.f32.partialorder %v1130_v63, 0.0  ;;  %v1441_v3 = vmul.f32 0.2, %v1130_v63  ;;  %vm1345_vm5 = vcmp.ge.f32.partialorder %v1210_v0, 0.0  ;;  %v1473_v4 = vmul.f32 0.2, %v1210_v0 }
 0x179   : > { %v1378_v17 = vmul.f32 0.2, %v973_v11  ;;  %v1410_v18 = vmul.f32 0.2, %v1053_v12  ;;  %vm1250_vm6 = vcmp.ge.f32.partialorder %v973_v11, 0.0  ;;  %vm1282_vm7 = vcmp.ge.f32.partialorder %v1053_v12, 0.0 }
 0x17a   : > { %v1569_v7 = vsel %vm1313_vm4, %v1130_v63, %v1441_v3  ;;  %v1601_v8 = vsel %vm1345_vm5, %v1210_v0, %v1473_v4 }
 0x17b   : > { %v2599_v9 = vpack.c.bf16 %v1569_v7, %v1568_v5  ;;  %v2679_v10 = vpack.c.bf16 %v1601_v8, %v1600_v6  ;;  %v1506_v25 = vsel %vm1250_vm6, %v973_v11, %v1378_v17  ;;  %v1538_v26 = vsel %vm1282_vm7, %v1053_v12, %v1410_v18 }
 0x17d   : > { %2735 = vst [vmem:[%s2957_s4 + $0x168] sm:$0xff] %v2599_v9   ;;  %v1132_v13 = vpop.f32.mrf.mxu2  ;;  %v1212_v14 = vpop.f32.mrf.mxu3 }
 0x17e   : > { %2751 = vst [vmem:[%s2957_s4 + $0x1e8] sm:$0xff] %v2679_v10   ;;  %v974_v15 = vpop.f32.mrf.mxu0  ;;  %v1054_v16 = vpop.f32.mrf.mxu1  ;;  %v1133_v23 = vadd.f32 %v3127_v44, %v1132_v13  ;;  %v1213_v24 = vadd.f32 %v3127_v44, %v1212_v14 }
 0x17f   : > { %v975_v19 = vadd.f32 %v3127_v44, %v974_v15  ;;  %v1055_v20 = vadd.f32 %v3127_v44, %v1054_v16 }
 0x180   : > { %v1442_v33 = vmul.f32 0.2, %v1133_v23  ;;  %v1474_v34 = vmul.f32 0.2, %v1213_v24  ;;  %vm1314_vm10 = vcmp.ge.f32.partialorder %v1133_v23, 0.0  ;;  %vm1346_vm11 = vcmp.ge.f32.partialorder %v1213_v24, 0.0 }
 0x181   : > { %vm1251_vm8 = vcmp.ge.f32.partialorder %v975_v19, 0.0  ;;  %v1379_v21 = vmul.f32 0.2, %v975_v19  ;;  %vm1283_vm9 = vcmp.ge.f32.partialorder %v1055_v20, 0.0  ;;  %v1411_v22 = vmul.f32 0.2, %v1055_v20 }
 0x182   : > { %v1570_v41 = vsel %vm1314_vm10, %v1133_v23, %v1442_v33  ;;  %v1602_v42 = vsel %vm1346_vm11, %v1213_v24, %v1474_v34 }
 0x183   : > { %v1507_v27 = vsel %vm1251_vm8, %v975_v19, %v1379_v21  ;;  %v1539_v28 = vsel %vm1283_vm9, %v1055_v20, %v1411_v22 }
 0x184   : > { %v2444_v29 = vpack.c.bf16 %v1507_v27, %v1506_v25  ;;  %v2524_v30 = vpack.c.bf16 %v1539_v28, %v1538_v26 }
 0x185   : > { %v1134_v31 = vpop.f32.mrf.mxu2  ;;  %v1214_v32 = vpop.f32.mrf.mxu3 }
 0x186   : > { %2704 = vst [vmem:[%s2957_s4 + $0x70] sm:$0xff] %v2444_v29   ;;  %v1135_v35 = vadd.f32 %v3127_v44, %v1134_v31  ;;  %v1215_v36 = vadd.f32 %v3127_v44, %v1214_v32  ;;  %v977_v37 = vpop.f32.mrf.mxu0  ;;  %v1057_v38 = vpop.f32.mrf.mxu1 }
 0x187   : > { %2720 = vst [vmem:[%s2957_s4 + $0xf0] sm:$0xff] %v2524_v30   ;;  %v978_v48 = vadd.f32 %v3127_v44, %v977_v37  ;;  %v1058_v49 = vadd.f32 %v3127_v44, %v1057_v38 }
 0x188   : > { %vm1315_vm12 = vcmp.ge.f32.partialorder %v1135_v35, 0.0  ;;  %v1443_v39 = vmul.f32 0.2, %v1135_v35  ;;  %vm1347_vm13 = vcmp.ge.f32.partialorder %v1215_v36, 0.0  ;;  %v1475_v40 = vmul.f32 0.2, %v1215_v36 }
 0x189   : > { %v1380_v54 = vmul.f32 0.2, %v978_v48  ;;  %v1412_v55 = vmul.f32 0.2, %v1058_v49  ;;  %vm1252_vm14 = vcmp.ge.f32.partialorder %v978_v48, 0.0  ;;  %vm1284_vm2 = vcmp.ge.f32.partialorder %v1058_v49, 0.0 }
 0x18a   : > { %v1571_v43 = vsel %vm1315_vm12, %v1135_v35, %v1443_v39  ;;  %v1603_v45 = vsel %vm1347_vm13, %v1215_v36, %v1475_v40 }
 0x18b   : > { %v2604_v46 = vpack.c.bf16 %v1571_v43, %v1570_v41  ;;  %v2684_v47 = vpack.c.bf16 %v1603_v45, %v1602_v42  ;;  %v1508_v62 = vsel %vm1252_vm14, %v978_v48, %v1380_v54  ;;  %v1540_v63 = vsel %vm1284_vm2, %v1058_v49, %v1412_v55 }
 0x18d   : > { %2736 = vst [vmem:[%s2957_s4 + $0x170] sm:$0xff] %v2604_v46   ;;  %v1137_v50 = vpop.f32.mrf.mxu2  ;;  %v1217_v51 = vpop.f32.mrf.mxu3 }
 0x18e   : > { %2752 = vst [vmem:[%s2957_s4 + $0x1f0] sm:$0xff] %v2684_v47   ;;  %v979_v52 = vpop.f32.mrf.mxu0  ;;  %v1059_v53 = vpop.f32.mrf.mxu1  ;;  %v1138_v60 = vadd.f32 %v3127_v44, %v1137_v50  ;;  %v1218_v61 = vadd.f32 %v3127_v44, %v1217_v51 }
 0x18f   : > { %v980_v56 = vadd.f32 %v3127_v44, %v979_v52  ;;  %v1060_v57 = vadd.f32 %v3127_v44, %v1059_v53 }
 0x190   : > { %v1444_v6 = vmul.f32 0.2, %v1138_v60  ;;  %v1476_v7 = vmul.f32 0.2, %v1218_v61  ;;  %vm1316_vm1 = vcmp.ge.f32.partialorder %v1138_v60, 0.0  ;;  %vm1348_vm3 = vcmp.ge.f32.partialorder %v1218_v61, 0.0 }
 0x191   : > { %vm1253_vm15 = vcmp.ge.f32.partialorder %v980_v56, 0.0  ;;  %v1381_v58 = vmul.f32 0.2, %v980_v56  ;;  %vm1285_vm0 = vcmp.ge.f32.partialorder %v1060_v57, 0.0  ;;  %v1413_v59 = vmul.f32 0.2, %v1060_v57 }
 0x192   : > { %v1572_v12 = vsel %vm1316_vm1, %v1138_v60, %v1444_v6  ;;  %v1604_v13 = vsel %vm1348_vm3, %v1218_v61, %v1476_v7 }
 0x193   : > { %v1509_v0 = vsel %vm1253_vm15, %v980_v56, %v1381_v58  ;;  %v1541_v1 = vsel %vm1285_vm0, %v1060_v57, %v1413_v59 }
 0x194   : > { %v2449_v2 = vpack.c.bf16 %v1509_v0, %v1508_v62  ;;  %v2529_v3 = vpack.c.bf16 %v1541_v1, %v1540_v63 }
 0x195   : > { %v1139_v4 = vpop.f32.mrf.mxu2  ;;  %v1219_v5 = vpop.f32.mrf.mxu3 }
 0x196   : > { %2705 = vst [vmem:[%s2957_s4 + $0x78] sm:$0xff] %v2449_v2   ;;  %v1140_v8 = vadd.f32 %v3127_v44, %v1139_v4  ;;  %v1220_v9 = vadd.f32 %v3127_v44, %v1219_v5 }
 0x197   : > { %2721 = vst [vmem:[%s2957_s4 + $0xf8] sm:$0xff] %v2529_v3  }
 0x198   : > { %vm1317_vm4 = vcmp.ge.f32.partialorder %v1140_v8, 0.0  ;;  %v1445_v10 = vmul.f32 0.2, %v1140_v8  ;;  %vm1349_vm5 = vcmp.ge.f32.partialorder %v1220_v9, 0.0  ;;  %v1477_v11 = vmul.f32 0.2, %v1220_v9 }
 0x19a   : > { %v1573_v14 = vsel %vm1317_vm4, %v1140_v8, %v1445_v10  ;;  %v1605_v15 = vsel %vm1349_vm5, %v1220_v9, %v1477_v11 }
 0x19b   : > { %v2609_v16 = vpack.c.bf16 %v1573_v14, %v1572_v12  ;;  %v2689_v17 = vpack.c.bf16 %v1605_v15, %v1604_v13 }
 0x19d   : > { %2737 = vst [vmem:[%s2957_s4 + $0x178] sm:$0xff] %v2609_v16  }
 0x19e   : > { %2753 = vst [vmem:[%s2957_s4 + $0x1f8] sm:$0xff] %v2689_v17  }
 0x19f PF: > { %s13_s14 = sadd.s32 1, %s2809_s14   ;;  %s3219_s12 = smov %s2805_s13 }
 0x1a0   : > { %p10_p5 = scmp.ge.s32.totalorder %s13_s14, 4   ;;  %s3220_s13 = smov %s3222_s15 }
 0x1a2   :  { %12 = sbr.rel (!%p10_p5) target bundleno = 2 (0x2), region = 68 }

</bundles_post_ra>
